<compile_context>
chip_gen: v7x
topology: tpu7x:2x2x1
jax: 0.10.0
libtpu: 0.0.40
codegen_flags: <defaults>
</compile_context>

<pallas_src>
import functools

import jax
import jax.numpy as jnp
from jax.experimental import pallas as pl
from jax.experimental.pallas import tpu as pltpu


def _round_up(x, m):
    return ((x + m - 1) // m) * m


# ----------------------------- Pallas kernel --------------------------------

def _denoiser_kernel(x_ref, w1_ref, b1_ref, w2_ref, b2_ref, w3_ref, b3_ref,
                     o_ref, h1_scr, *, width, base, npix):
    """Whole image per grid step: conv3x3+ReLU -> conv3x3+ReLU -> conv1x1.

    Layout: channels on sublanes, flattened pixels (y*width + x) on lanes.
    x_ref / h1_scr are row-flattened buffers with `base` leading zeros and a zero
    tail, so a (dy, dx) conv tap is just a static lane-offset slice.
    """
    f32 = jnp.float32

    # Lane masks killing the horizontal wrap-around of the flattened layout:
    # taps with dx==0 are invalid at x==0, taps with dx==2 at x==width-1.
    col = jax.lax.broadcasted_iota(jnp.int32, (1, npix), 1) % width
    not_left = (col != 0).astype(jnp.bfloat16)
    not_right = (col != width - 1).astype(jnp.bfloat16)

    taps = [(dy, dx) for dy in range(3) for dx in range(3)]

    def conv3x3_relu(read_slice, w_ref, b_ref):
        out_ch = w_ref.shape[1]
        acc = jnp.zeros((out_ch, npix), f32)
        for t, (dy, dx) in enumerate(taps):
            s = base + (dy - 1) * width + (dx - 1)          # static lane offset
            xs = read_slice(s)                              # (in_ch, npix) bf16
            if dx == 0:
                xs = xs * not_left
            elif dx == 2:
                xs = xs * not_right
            acc = acc + jnp.dot(w_ref[t], xs, preferred_element_type=f32)
        return jnp.maximum(acc + b_ref[...], 0.0)           # f32 bias + ReLU

    # ---- base_net layer 1: 3x3 conv, C_in -> hidden, ReLU (reads raw input) ----
    h1 = conv3x3_relu(lambda s: x_ref[0, :, s:s + npix], w1_ref, b1_ref)

    # Stash h1 (with zero halo) in VMEM scratch: layer 2 never touches HBM.
    h1_scr[...] = jnp.zeros_like(h1_scr)
    h1_scr[:, base:base + npix] = h1.astype(jnp.bfloat16)   # lane-aligned store

    # ---- base_net layer 2: 3x3 conv, hidden -> hidden, ReLU --------------------
    h2 = conv3x3_relu(lambda s: h1_scr[:, s:s + npix], w2_ref, b2_ref)

    # ---- denoiser_head: 1x1 conv, hidden -> C_out (plain channel GEMM) ---------
    out = jnp.dot(w3_ref[...], h2.astype(jnp.bfloat16),
                  preferred_element_type=f32) + b3_ref[...]
    o_ref[0, :, :] = out.astype(o_ref.dtype)                # lane-dense (C_out, H*W)


# ------------------------------ JAX wrapper ----------------------------------

def common_denoiser_forward(x_nchw, params):
    """Eval-mode CommonDenoiser.forward: denoiser_head(base_net(x)). NCHW in/out, f32."""
    B, C, H, W = x_nchw.shape
    hid = params["w1"].shape[0]
    c_out = params["w3"].shape[0]
    npix = H * W
    base = _round_up(W + 1, 128)                 # halo >= W+1, lane-aligned interior
    L = _round_up(base + npix + W + 1, 128)      # flat buffer length

    # Row-flattened, halo-padded input buffer (bf16 operands, f32 accumulation in-kernel).
    xbuf = jnp.zeros((B, C, L), jnp.bfloat16)
    xbuf = jax.lax.dynamic_update_slice(
        xbuf, x_nchw.reshape(B, C, npix).astype(jnp.bfloat16), (0, 0, base))

    # Conv weights as 9 per-tap (C_out, C_in) matrices; biases as (C_out, 1) f32.
    w1 = jnp.transpose(params["w1"], (2, 3, 0, 1)).reshape(9, hid, C).astype(jnp.bfloat16)
    w2 = jnp.transpose(params["w2"], (2, 3, 0, 1)).reshape(9, hid, hid).astype(jnp.bfloat16)
    w3 = params["w3"][:, :, 0, 0].astype(jnp.bfloat16)
    b1 = params["b1"].reshape(hid, 1).astype(jnp.float32)
    b2 = params["b2"].reshape(hid, 1).astype(jnp.float32)
    b3 = params["b3"].reshape(c_out, 1).astype(jnp.float32)

    kernel = functools.partial(_denoiser_kernel, width=W, base=base, npix=npix)

    flops = 2 * B * npix * (9 * C * hid + 9 * hid * hid + hid * c_out)
    bytes_accessed = (xbuf.size * 2 + w1.size * 2 + w2.size * 2 + w3.size * 2
                      + (b1.size + b2.size + b3.size) * 4 + B * c_out * npix * 4)

    out = pl.pallas_call(
        kernel,
        out_shape=jax.ShapeDtypeStruct((B, c_out, npix), jnp.float32),
        grid_spec=pltpu.PrefetchScalarGridSpec(
            num_scalar_prefetch=0,
            grid=(B,),                                       # one whole image per step
            in_specs=[
                pl.BlockSpec((1, C, L), lambda b: (b, 0, 0)),
                pl.BlockSpec((9, hid, C), lambda b: (0, 0, 0)),
                pl.BlockSpec((hid, 1), lambda b: (0, 0)),
                pl.BlockSpec((9, hid, hid), lambda b: (0, 0, 0)),
                pl.BlockSpec((hid, 1), lambda b: (0, 0)),
                pl.BlockSpec((c_out, hid), lambda b: (0, 0)),
                pl.BlockSpec((c_out, 1), lambda b: (0, 0)),
            ],
            out_specs=pl.BlockSpec((1, c_out, npix), lambda b: (b, 0, 0)),
            scratch_shapes=[pltpu.VMEM((hid, L), jnp.bfloat16)],
        ),
        compiler_params=pltpu.CompilerParams(
            dimension_semantics=("parallel",)),
        cost_estimate=pl.CostEstimate(
            flops=flops, transcendentals=0, bytes_accessed=bytes_accessed),
    )(xbuf, w1, b1, w2, b2, w3, b3)

    return out.reshape(B, c_out, H, W)           # (B, C_out, H*W) -> NCHW, free reshape


# ------------------------ reference / params / driver -------------------------

def _reference_forward(x_nchw, params):
    """Pure-JAX (XLA conv) reference of the same forward pass, f32."""
    def conv(x, w, b, relu):
        y = jax.lax.conv_general_dilated(
            x, w, window_strides=(1, 1), padding="SAME",
            dimension_numbers=("NCHW", "OIHW", "NCHW"))
        y = y + b.reshape(1, -1, 1, 1)
        return jnp.maximum(y, 0.0) if relu else y
    h = conv(x_nchw, params["w1"], params["b1"], True)
    h = conv(h, params["w2"], params["b2"], True)
    return conv(h, params["w3"], params["b3"], False)


def init_params(key, c_in=4, hidden=32, c_out=4):
    ks = jax.random.split(key, 6)
    return {
        "w1": jax.random.normal(ks[0], (hidden, c_in, 3, 3), jnp.float32) / (3.0 * c_in ** 0.5),
        "b1": 0.05 * jax.random.normal(ks[1], (hidden,), jnp.float32),
        "w2": jax.random.normal(ks[2], (hidden, hidden, 3, 3), jnp.float32) / (3.0 * hidden ** 0.5),
        "b2": 0.05 * jax.random.normal(ks[3], (hidden,), jnp.float32),
        "w3": jax.random.normal(ks[4], (c_out, hidden, 1, 1), jnp.float32) / (hidden ** 0.5),
        "b3": 0.05 * jax.random.normal(ks[5], (c_out,), jnp.float32),
    }


if __name__ == "__main__":
    key = jax.random.PRNGKey(0)
    k_x, k_p = jax.random.split(key)

    B, C, H, W = 2, 4, 16, 16                    # noisy input, NCHW
    x = jax.random.normal(k_x, (B, C, H, W), jnp.float32)
    params = init_params(k_p, c_in=C, hidden=32, c_out=C)

    out = jax.block_until_ready(jax.jit(common_denoiser_forward)(x, params))
    assert out.shape == (B, C, H, W), out.shape
    assert bool(jnp.all(jnp.isfinite(out)))

    # Correctness vs pure-XLA reference (loose tolerance: bf16 operands, f32 accumulation).
    ref = _reference_forward(x, params)
    max_err = float(jnp.max(jnp.abs(out - ref)))
    assert max_err < 2e-1, f"max |err| vs XLA reference = {max_err}"

    print("KERNEL_OK")
</pallas_src>

<mosaic_0001>
module attributes {stable_mosaic.version = 11 : i64} {
  func.func @_denoiser_kernel(%arg0: i32, %arg1: memref<1x4x512xbf16, #tpu.memory_space<vmem>>, %arg2: memref<9x32x4xbf16, #tpu.memory_space<vmem>>, %arg3: memref<32x1xf32, #tpu.memory_space<vmem>>, %arg4: memref<9x32x32xbf16, #tpu.memory_space<vmem>>, %arg5: memref<32x1xf32, #tpu.memory_space<vmem>>, %arg6: memref<4x32xbf16, #tpu.memory_space<vmem>>, %arg7: memref<4x1xf32, #tpu.memory_space<vmem>>, %arg8: memref<1x4x256xf32, #tpu.memory_space<vmem>>, %arg9: memref<32x512xbf16, #tpu.memory_space<vmem>>) attributes {dimension_semantics = [#tpu.dimension_semantics<parallel>], iteration_bounds = array<i64: 2>, scalar_prefetch = 0 : i64, scratch_operands = 1 : i64, tpu.core_type = #tpu.core_type<tc>, window_params = [{transform_indices = @transform_0, window_bounds = array<i64: 1, 4, 512>}, {pipeline_mode = #tpu.pipeline_mode<synchronous>, transform_indices = @transform_1, window_bounds = array<i64: 9, 32, 4>}, {pipeline_mode = #tpu.pipeline_mode<synchronous>, transform_indices = @transform_2, window_bounds = array<i64: 32, 1>}, {pipeline_mode = #tpu.pipeline_mode<synchronous>, transform_indices = @transform_3, window_bounds = array<i64: 9, 32, 32>}, {pipeline_mode = #tpu.pipeline_mode<synchronous>, transform_indices = @transform_4, window_bounds = array<i64: 32, 1>}, {pipeline_mode = #tpu.pipeline_mode<synchronous>, transform_indices = @transform_5, window_bounds = array<i64: 4, 32>}, {pipeline_mode = #tpu.pipeline_mode<synchronous>, transform_indices = @transform_6, window_bounds = array<i64: 4, 1>}, {transform_indices = @transform_7, window_bounds = array<i64: 1, 4, 256>}]} {
    %0 = tpu.iota {dimensions = array<i32: 1>} : vector<1x256xi32>
    %c16_i32 = arith.constant 16 : i32
    %c0_i32 = arith.constant 0 : i32
    %1 = arith.cmpi eq, %c16_i32, %c0_i32 : i32
    %c1_i32 = arith.constant 1 : i32
    %2 = arith.select %1, %c1_i32, %c16_i32 : i32
    %3 = vector.broadcast %2 : i32 to vector<1x256xi32>
    %4 = arith.remsi %0, %3 : vector<1x256xi32>
    %c0_i32_0 = arith.constant 0 : i32
    %5 = vector.broadcast %c0_i32_0 : i32 to vector<1x256xi32>
    %6 = arith.cmpi ne, %4, %5 : vector<1x256xi32>
    %c0_i32_1 = arith.constant 0 : i32
    %7 = vector.broadcast %c0_i32_1 : i32 to vector<1x256xi32>
    %8 = arith.cmpi slt, %4, %7 : vector<1x256xi32>
    %c0_i32_2 = arith.constant 0 : i32
    %9 = arith.cmpi slt, %2, %c0_i32_2 : i32
    %10 = vector.broadcast %9 : i1 to vector<1x256xi1>
    %11 = vector.broadcast %10 : vector<1x256xi1> to vector<1x256xi1>
    %12 = arith.xori %8, %11 : vector<1x256xi1>
    %13 = arith.andi %12, %6 : vector<1x256xi1>
    %14 = vector.broadcast %2 : i32 to vector<1x256xi32>
    %15 = arith.addi %4, %14 : vector<1x256xi32>
    %16 = arith.select %13, %15, %4 : vector<1x256xi1>, vector<1x256xi32>
    %c0_i32_3 = arith.constant 0 : i32
    %17 = vector.broadcast %c0_i32_3 : i32 to vector<1x256xi32>
    %18 = arith.cmpi ne, %16, %17 : vector<1x256xi32>
    %19 = arith.extui %18 : vector<1x256xi1> to vector<1x256xi32>
    %20 = arith.sitofp %19 : vector<1x256xi32> to vector<1x256xf32>
    %21 = arith.truncf %20 : vector<1x256xf32> to vector<1x256xbf16>
    %c15_i32 = arith.constant 15 : i32
    %22 = vector.broadcast %c15_i32 : i32 to vector<1x256xi32>
    %23 = arith.cmpi ne, %16, %22 : vector<1x256xi32>
    %24 = arith.extui %23 : vector<1x256xi1> to vector<1x256xi32>
    %25 = arith.sitofp %24 : vector<1x256xi32> to vector<1x256xf32>
    %26 = arith.truncf %25 : vector<1x256xf32> to vector<1x256xbf16>
    %cst = arith.constant 0.000000e+00 : f32
    %27 = vector.broadcast %cst : f32 to vector<32x256xf32>
    %c0 = arith.constant 0 : index
    %c0_4 = arith.constant 0 : index
    %c111 = arith.constant 111 : index
    %28 = vector.load %arg1[%c0, %c0_4, %c111] : memref<1x4x512xbf16, #tpu.memory_space<vmem>>, vector<1x4x256xbf16>
    %29 = vector.shape_cast %28 : vector<1x4x256xbf16> to vector<4x256xbf16>
    %30 = vector.broadcast %21 : vector<1x256xbf16> to vector<4x256xbf16>
    %31 = arith.mulf %29, %30 : vector<4x256xbf16>
    %c0_5 = arith.constant 0 : index
    %c0_6 = arith.constant 0 : index
    %c0_7 = arith.constant 0 : index
    %32 = vector.load %arg2[%c0_5, %c0_6, %c0_7] : memref<9x32x4xbf16, #tpu.memory_space<vmem>>, vector<1x32x4xbf16>
    %33 = vector.shape_cast %32 : vector<1x32x4xbf16> to vector<32x4xbf16>
    %cst_8 = arith.constant dense<0.000000e+00> : vector<32x256xf32>
    %34 = tpu.matmul %33, %31, %cst_8 {dimension_numbers = #tpu.dot_dimension_numbers<[1], [0], [0], [1], [0, 0, 1, 1], [], []>} : vector<32x4xbf16>, vector<4x256xbf16>, vector<32x256xf32> -> vector<32x256xf32>
    %35 = arith.addf %27, %34 : vector<32x256xf32>
    %c0_9 = arith.constant 0 : index
    %c0_10 = arith.constant 0 : index
    %c112 = arith.constant 112 : index
    %36 = vector.load %arg1[%c0_9, %c0_10, %c112] : memref<1x4x512xbf16, #tpu.memory_space<vmem>>, vector<1x4x256xbf16>
    %37 = vector.shape_cast %36 : vector<1x4x256xbf16> to vector<4x256xbf16>
    %c1 = arith.constant 1 : index
    %c0_11 = arith.constant 0 : index
    %c0_12 = arith.constant 0 : index
    %38 = vector.load %arg2[%c1, %c0_11, %c0_12] : memref<9x32x4xbf16, #tpu.memory_space<vmem>>, vector<1x32x4xbf16>
    %39 = vector.shape_cast %38 : vector<1x32x4xbf16> to vector<32x4xbf16>
    %cst_13 = arith.constant dense<0.000000e+00> : vector<32x256xf32>
    %40 = tpu.matmul %39, %37, %cst_13 {dimension_numbers = #tpu.dot_dimension_numbers<[1], [0], [0], [1], [0, 0, 1, 1], [], []>} : vector<32x4xbf16>, vector<4x256xbf16>, vector<32x256xf32> -> vector<32x256xf32>
    %41 = arith.addf %35, %40 : vector<32x256xf32>
    %c0_14 = arith.constant 0 : index
    %c0_15 = arith.constant 0 : index
    %c113 = arith.constant 113 : index
    %42 = vector.load %arg1[%c0_14, %c0_15, %c113] : memref<1x4x512xbf16, #tpu.memory_space<vmem>>, vector<1x4x256xbf16>
    %43 = vector.shape_cast %42 : vector<1x4x256xbf16> to vector<4x256xbf16>
    %44 = vector.broadcast %26 : vector<1x256xbf16> to vector<4x256xbf16>
    %45 = arith.mulf %43, %44 : vector<4x256xbf16>
    %c2 = arith.constant 2 : index
    %c0_16 = arith.constant 0 : index
    %c0_17 = arith.constant 0 : index
    %46 = vector.load %arg2[%c2, %c0_16, %c0_17] : memref<9x32x4xbf16, #tpu.memory_space<vmem>>, vector<1x32x4xbf16>
    %47 = vector.shape_cast %46 : vector<1x32x4xbf16> to vector<32x4xbf16>
    %cst_18 = arith.constant dense<0.000000e+00> : vector<32x256xf32>
    %48 = tpu.matmul %47, %45, %cst_18 {dimension_numbers = #tpu.dot_dimension_numbers<[1], [0], [0], [1], [0, 0, 1, 1], [], []>} : vector<32x4xbf16>, vector<4x256xbf16>, vector<32x256xf32> -> vector<32x256xf32>
    %49 = arith.addf %41, %48 : vector<32x256xf32>
    %c0_19 = arith.constant 0 : index
    %c0_20 = arith.constant 0 : index
    %c127 = arith.constant 127 : index
    %50 = vector.load %arg1[%c0_19, %c0_20, %c127] : memref<1x4x512xbf16, #tpu.memory_space<vmem>>, vector<1x4x256xbf16>
    %51 = vector.shape_cast %50 : vector<1x4x256xbf16> to vector<4x256xbf16>
    %52 = vector.broadcast %21 : vector<1x256xbf16> to vector<4x256xbf16>
    %53 = arith.mulf %51, %52 : vector<4x256xbf16>
    %c3 = arith.constant 3 : index
    %c0_21 = arith.constant 0 : index
    %c0_22 = arith.constant 0 : index
    %54 = vector.load %arg2[%c3, %c0_21, %c0_22] : memref<9x32x4xbf16, #tpu.memory_space<vmem>>, vector<1x32x4xbf16>
    %55 = vector.shape_cast %54 : vector<1x32x4xbf16> to vector<32x4xbf16>
    %cst_23 = arith.constant dense<0.000000e+00> : vector<32x256xf32>
    %56 = tpu.matmul %55, %53, %cst_23 {dimension_numbers = #tpu.dot_dimension_numbers<[1], [0], [0], [1], [0, 0, 1, 1], [], []>} : vector<32x4xbf16>, vector<4x256xbf16>, vector<32x256xf32> -> vector<32x256xf32>
    %57 = arith.addf %49, %56 : vector<32x256xf32>
    %c0_24 = arith.constant 0 : index
    %c0_25 = arith.constant 0 : index
    %c128 = arith.constant 128 : index
    %58 = vector.load %arg1[%c0_24, %c0_25, %c128] : memref<1x4x512xbf16, #tpu.memory_space<vmem>>, vector<1x4x256xbf16>
    %59 = vector.shape_cast %58 : vector<1x4x256xbf16> to vector<4x256xbf16>
    %c4 = arith.constant 4 : index
    %c0_26 = arith.constant 0 : index
    %c0_27 = arith.constant 0 : index
    %60 = vector.load %arg2[%c4, %c0_26, %c0_27] : memref<9x32x4xbf16, #tpu.memory_space<vmem>>, vector<1x32x4xbf16>
    %61 = vector.shape_cast %60 : vector<1x32x4xbf16> to vector<32x4xbf16>
    %cst_28 = arith.constant dense<0.000000e+00> : vector<32x256xf32>
    %62 = tpu.matmul %61, %59, %cst_28 {dimension_numbers = #tpu.dot_dimension_numbers<[1], [0], [0], [1], [0, 0, 1, 1], [], []>} : vector<32x4xbf16>, vector<4x256xbf16>, vector<32x256xf32> -> vector<32x256xf32>
    %63 = arith.addf %57, %62 : vector<32x256xf32>
    %c0_29 = arith.constant 0 : index
    %c0_30 = arith.constant 0 : index
    %c129 = arith.constant 129 : index
    %64 = vector.load %arg1[%c0_29, %c0_30, %c129] : memref<1x4x512xbf16, #tpu.memory_space<vmem>>, vector<1x4x256xbf16>
    %65 = vector.shape_cast %64 : vector<1x4x256xbf16> to vector<4x256xbf16>
    %66 = vector.broadcast %26 : vector<1x256xbf16> to vector<4x256xbf16>
    %67 = arith.mulf %65, %66 : vector<4x256xbf16>
    %c5 = arith.constant 5 : index
    %c0_31 = arith.constant 0 : index
    %c0_32 = arith.constant 0 : index
    %68 = vector.load %arg2[%c5, %c0_31, %c0_32] : memref<9x32x4xbf16, #tpu.memory_space<vmem>>, vector<1x32x4xbf16>
    %69 = vector.shape_cast %68 : vector<1x32x4xbf16> to vector<32x4xbf16>
    %cst_33 = arith.constant dense<0.000000e+00> : vector<32x256xf32>
    %70 = tpu.matmul %69, %67, %cst_33 {dimension_numbers = #tpu.dot_dimension_numbers<[1], [0], [0], [1], [0, 0, 1, 1], [], []>} : vector<32x4xbf16>, vector<4x256xbf16>, vector<32x256xf32> -> vector<32x256xf32>
    %71 = arith.addf %63, %70 : vector<32x256xf32>
    %c0_34 = arith.constant 0 : index
    %c0_35 = arith.constant 0 : index
    %c143 = arith.constant 143 : index
    %72 = vector.load %arg1[%c0_34, %c0_35, %c143] : memref<1x4x512xbf16, #tpu.memory_space<vmem>>, vector<1x4x256xbf16>
    %73 = vector.shape_cast %72 : vector<1x4x256xbf16> to vector<4x256xbf16>
    %74 = vector.broadcast %21 : vector<1x256xbf16> to vector<4x256xbf16>
    %75 = arith.mulf %73, %74 : vector<4x256xbf16>
    %c6 = arith.constant 6 : index
    %c0_36 = arith.constant 0 : index
    %c0_37 = arith.constant 0 : index
    %76 = vector.load %arg2[%c6, %c0_36, %c0_37] : memref<9x32x4xbf16, #tpu.memory_space<vmem>>, vector<1x32x4xbf16>
    %77 = vector.shape_cast %76 : vector<1x32x4xbf16> to vector<32x4xbf16>
    %cst_38 = arith.constant dense<0.000000e+00> : vector<32x256xf32>
    %78 = tpu.matmul %77, %75, %cst_38 {dimension_numbers = #tpu.dot_dimension_numbers<[1], [0], [0], [1], [0, 0, 1, 1], [], []>} : vector<32x4xbf16>, vector<4x256xbf16>, vector<32x256xf32> -> vector<32x256xf32>
    %79 = arith.addf %71, %78 : vector<32x256xf32>
    %c0_39 = arith.constant 0 : index
    %c0_40 = arith.constant 0 : index
    %c144 = arith.constant 144 : index
    %80 = vector.load %arg1[%c0_39, %c0_40, %c144] : memref<1x4x512xbf16, #tpu.memory_space<vmem>>, vector<1x4x256xbf16>
    %81 = vector.shape_cast %80 : vector<1x4x256xbf16> to vector<4x256xbf16>
    %c7 = arith.constant 7 : index
    %c0_41 = arith.constant 0 : index
    %c0_42 = arith.constant 0 : index
    %82 = vector.load %arg2[%c7, %c0_41, %c0_42] : memref<9x32x4xbf16, #tpu.memory_space<vmem>>, vector<1x32x4xbf16>
    %83 = vector.shape_cast %82 : vector<1x32x4xbf16> to vector<32x4xbf16>
    %cst_43 = arith.constant dense<0.000000e+00> : vector<32x256xf32>
    %84 = tpu.matmul %83, %81, %cst_43 {dimension_numbers = #tpu.dot_dimension_numbers<[1], [0], [0], [1], [0, 0, 1, 1], [], []>} : vector<32x4xbf16>, vector<4x256xbf16>, vector<32x256xf32> -> vector<32x256xf32>
    %85 = arith.addf %79, %84 : vector<32x256xf32>
    %c0_44 = arith.constant 0 : index
    %c0_45 = arith.constant 0 : index
    %c145 = arith.constant 145 : index
    %86 = vector.load %arg1[%c0_44, %c0_45, %c145] : memref<1x4x512xbf16, #tpu.memory_space<vmem>>, vector<1x4x256xbf16>
    %87 = vector.shape_cast %86 : vector<1x4x256xbf16> to vector<4x256xbf16>
    %88 = vector.broadcast %26 : vector<1x256xbf16> to vector<4x256xbf16>
    %89 = arith.mulf %87, %88 : vector<4x256xbf16>
    %c8 = arith.constant 8 : index
    %c0_46 = arith.constant 0 : index
    %c0_47 = arith.constant 0 : index
    %90 = vector.load %arg2[%c8, %c0_46, %c0_47] : memref<9x32x4xbf16, #tpu.memory_space<vmem>>, vector<1x32x4xbf16>
    %91 = vector.shape_cast %90 : vector<1x32x4xbf16> to vector<32x4xbf16>
    %cst_48 = arith.constant dense<0.000000e+00> : vector<32x256xf32>
    %92 = tpu.matmul %91, %89, %cst_48 {dimension_numbers = #tpu.dot_dimension_numbers<[1], [0], [0], [1], [0, 0, 1, 1], [], []>} : vector<32x4xbf16>, vector<4x256xbf16>, vector<32x256xf32> -> vector<32x256xf32>
    %93 = arith.addf %85, %92 : vector<32x256xf32>
    %c0_49 = arith.constant 0 : index
    %c0_50 = arith.constant 0 : index
    %94 = vector.load %arg3[%c0_49, %c0_50] : memref<32x1xf32, #tpu.memory_space<vmem>>, vector<32x1xf32>
    %95 = vector.broadcast %94 : vector<32x1xf32> to vector<32x256xf32>
    %96 = arith.addf %93, %95 : vector<32x256xf32>
    %cst_51 = arith.constant 0.000000e+00 : f32
    %97 = vector.broadcast %cst_51 : f32 to vector<32x256xf32>
    %98 = arith.maximumf %96, %97 : vector<32x256xf32>
    %cst_52 = arith.constant 0.000000e+00 : bf16
    %99 = vector.broadcast %cst_52 : bf16 to vector<32x512xbf16>
    %c0_53 = arith.constant 0 : index
    %c0_54 = arith.constant 0 : index
    %100 = vector.load %arg9[%c0_53, %c0_54] : memref<32x512xbf16, #tpu.memory_space<vmem>>, vector<32x512xbf16>
    tpu.vector_store %arg9[%c0_53, %c0_54], %99 {strides = array<i32>} : memref<32x512xbf16, #tpu.memory_space<vmem>>, vector<32x512xbf16>,
    %101 = arith.truncf %98 : vector<32x256xf32> to vector<32x256xbf16>
    %c0_55 = arith.constant 0 : index
    %c128_56 = arith.constant 128 : index
    %102 = vector.load %arg9[%c0_55, %c128_56] : memref<32x512xbf16, #tpu.memory_space<vmem>>, vector<32x256xbf16>
    tpu.vector_store %arg9[%c0_55, %c128_56], %101 {strides = array<i32>} : memref<32x512xbf16, #tpu.memory_space<vmem>>, vector<32x256xbf16>,
    %cst_57 = arith.constant 0.000000e+00 : f32
    %103 = vector.broadcast %cst_57 : f32 to vector<32x256xf32>
    %c0_58 = arith.constant 0 : index
    %c111_59 = arith.constant 111 : index
    %104 = vector.load %arg9[%c0_58, %c111_59] : memref<32x512xbf16, #tpu.memory_space<vmem>>, vector<32x256xbf16>
    %105 = vector.broadcast %21 : vector<1x256xbf16> to vector<32x256xbf16>
    %106 = arith.mulf %104, %105 : vector<32x256xbf16>
    %c0_60 = arith.constant 0 : index
    %c0_61 = arith.constant 0 : index
    %c0_62 = arith.constant 0 : index
    %107 = vector.load %arg4[%c0_60, %c0_61, %c0_62] : memref<9x32x32xbf16, #tpu.memory_space<vmem>>, vector<1x32x32xbf16>
    %108 = vector.shape_cast %107 : vector<1x32x32xbf16> to vector<32x32xbf16>
    %cst_63 = arith.constant dense<0.000000e+00> : vector<32x256xf32>
    %109 = tpu.matmul %108, %106, %cst_63 {dimension_numbers = #tpu.dot_dimension_numbers<[1], [0], [0], [1], [0, 0, 1, 1], [], []>} : vector<32x32xbf16>, vector<32x256xbf16>, vector<32x256xf32> -> vector<32x256xf32>
    %110 = arith.addf %103, %109 : vector<32x256xf32>
    %c0_64 = arith.constant 0 : index
    %c112_65 = arith.constant 112 : index
    %111 = vector.load %arg9[%c0_64, %c112_65] : memref<32x512xbf16, #tpu.memory_space<vmem>>, vector<32x256xbf16>
    %c1_66 = arith.constant 1 : index
    %c0_67 = arith.constant 0 : index
    %c0_68 = arith.constant 0 : index
    %112 = vector.load %arg4[%c1_66, %c0_67, %c0_68] : memref<9x32x32xbf16, #tpu.memory_space<vmem>>, vector<1x32x32xbf16>
    %113 = vector.shape_cast %112 : vector<1x32x32xbf16> to vector<32x32xbf16>
    %cst_69 = arith.constant dense<0.000000e+00> : vector<32x256xf32>
    %114 = tpu.matmul %113, %111, %cst_69 {dimension_numbers = #tpu.dot_dimension_numbers<[1], [0], [0], [1], [0, 0, 1, 1], [], []>} : vector<32x32xbf16>, vector<32x256xbf16>, vector<32x256xf32> -> vector<32x256xf32>
    %115 = arith.addf %110, %114 : vector<32x256xf32>
    %c0_70 = arith.constant 0 : index
    %c113_71 = arith.constant 113 : index
    %116 = vector.load %arg9[%c0_70, %c113_71] : memref<32x512xbf16, #tpu.memory_space<vmem>>, vector<32x256xbf16>
    %117 = vector.broadcast %26 : vector<1x256xbf16> to vector<32x256xbf16>
    %118 = arith.mulf %116, %117 : vector<32x256xbf16>
    %c2_72 = arith.constant 2 : index
    %c0_73 = arith.constant 0 : index
    %c0_74 = arith.constant 0 : index
    %119 = vector.load %arg4[%c2_72, %c0_73, %c0_74] : memref<9x32x32xbf16, #tpu.memory_space<vmem>>, vector<1x32x32xbf16>
    %120 = vector.shape_cast %119 : vector<1x32x32xbf16> to vector<32x32xbf16>
    %cst_75 = arith.constant dense<0.000000e+00> : vector<32x256xf32>
    %121 = tpu.matmul %120, %118, %cst_75 {dimension_numbers = #tpu.dot_dimension_numbers<[1], [0], [0], [1], [0, 0, 1, 1], [], []>} : vector<32x32xbf16>, vector<32x256xbf16>, vector<32x256xf32> -> vector<32x256xf32>
    %122 = arith.addf %115, %121 : vector<32x256xf32>
    %c0_76 = arith.constant 0 : index
    %c127_77 = arith.constant 127 : index
    %123 = vector.load %arg9[%c0_76, %c127_77] : memref<32x512xbf16, #tpu.memory_space<vmem>>, vector<32x256xbf16>
    %124 = vector.broadcast %21 : vector<1x256xbf16> to vector<32x256xbf16>
    %125 = arith.mulf %123, %124 : vector<32x256xbf16>
    %c3_78 = arith.constant 3 : index
    %c0_79 = arith.constant 0 : index
    %c0_80 = arith.constant 0 : index
    %126 = vector.load %arg4[%c3_78, %c0_79, %c0_80] : memref<9x32x32xbf16, #tpu.memory_space<vmem>>, vector<1x32x32xbf16>
    %127 = vector.shape_cast %126 : vector<1x32x32xbf16> to vector<32x32xbf16>
    %cst_81 = arith.constant dense<0.000000e+00> : vector<32x256xf32>
    %128 = tpu.matmul %127, %125, %cst_81 {dimension_numbers = #tpu.dot_dimension_numbers<[1], [0], [0], [1], [0, 0, 1, 1], [], []>} : vector<32x32xbf16>, vector<32x256xbf16>, vector<32x256xf32> -> vector<32x256xf32>
    %129 = arith.addf %122, %128 : vector<32x256xf32>
    %c0_82 = arith.constant 0 : index
    %c128_83 = arith.constant 128 : index
    %130 = vector.load %arg9[%c0_82, %c128_83] : memref<32x512xbf16, #tpu.memory_space<vmem>>, vector<32x256xbf16>
    %c4_84 = arith.constant 4 : index
    %c0_85 = arith.constant 0 : index
    %c0_86 = arith.constant 0 : index
    %131 = vector.load %arg4[%c4_84, %c0_85, %c0_86] : memref<9x32x32xbf16, #tpu.memory_space<vmem>>, vector<1x32x32xbf16>
    %132 = vector.shape_cast %131 : vector<1x32x32xbf16> to vector<32x32xbf16>
    %cst_87 = arith.constant dense<0.000000e+00> : vector<32x256xf32>
    %133 = tpu.matmul %132, %130, %cst_87 {dimension_numbers = #tpu.dot_dimension_numbers<[1], [0], [0], [1], [0, 0, 1, 1], [], []>} : vector<32x32xbf16>, vector<32x256xbf16>, vector<32x256xf32> -> vector<32x256xf32>
    %134 = arith.addf %129, %133 : vector<32x256xf32>
    %c0_88 = arith.constant 0 : index
    %c129_89 = arith.constant 129 : index
    %135 = vector.load %arg9[%c0_88, %c129_89] : memref<32x512xbf16, #tpu.memory_space<vmem>>, vector<32x256xbf16>
    %136 = vector.broadcast %26 : vector<1x256xbf16> to vector<32x256xbf16>
    %137 = arith.mulf %135, %136 : vector<32x256xbf16>
    %c5_90 = arith.constant 5 : index
    %c0_91 = arith.constant 0 : index
    %c0_92 = arith.constant 0 : index
    %138 = vector.load %arg4[%c5_90, %c0_91, %c0_92] : memref<9x32x32xbf16, #tpu.memory_space<vmem>>, vector<1x32x32xbf16>
    %139 = vector.shape_cast %138 : vector<1x32x32xbf16> to vector<32x32xbf16>
    %cst_93 = arith.constant dense<0.000000e+00> : vector<32x256xf32>
    %140 = tpu.matmul %139, %137, %cst_93 {dimension_numbers = #tpu.dot_dimension_numbers<[1], [0], [0], [1], [0, 0, 1, 1], [], []>} : vector<32x32xbf16>, vector<32x256xbf16>, vector<32x256xf32> -> vector<32x256xf32>
    %141 = arith.addf %134, %140 : vector<32x256xf32>
    %c0_94 = arith.constant 0 : index
    %c143_95 = arith.constant 143 : index
    %142 = vector.load %arg9[%c0_94, %c143_95] : memref<32x512xbf16, #tpu.memory_space<vmem>>, vector<32x256xbf16>
    %143 = vector.broadcast %21 : vector<1x256xbf16> to vector<32x256xbf16>
    %144 = arith.mulf %142, %143 : vector<32x256xbf16>
    %c6_96 = arith.constant 6 : index
    %c0_97 = arith.constant 0 : index
    %c0_98 = arith.constant 0 : index
    %145 = vector.load %arg4[%c6_96, %c0_97, %c0_98] : memref<9x32x32xbf16, #tpu.memory_space<vmem>>, vector<1x32x32xbf16>
    %146 = vector.shape_cast %145 : vector<1x32x32xbf16> to vector<32x32xbf16>
    %cst_99 = arith.constant dense<0.000000e+00> : vector<32x256xf32>
    %147 = tpu.matmul %146, %144, %cst_99 {dimension_numbers = #tpu.dot_dimension_numbers<[1], [0], [0], [1], [0, 0, 1, 1], [], []>} : vector<32x32xbf16>, vector<32x256xbf16>, vector<32x256xf32> -> vector<32x256xf32>
    %148 = arith.addf %141, %147 : vector<32x256xf32>
    %c0_100 = arith.constant 0 : index
    %c144_101 = arith.constant 144 : index
    %149 = vector.load %arg9[%c0_100, %c144_101] : memref<32x512xbf16, #tpu.memory_space<vmem>>, vector<32x256xbf16>
    %c7_102 = arith.constant 7 : index
    %c0_103 = arith.constant 0 : index
    %c0_104 = arith.constant 0 : index
    %150 = vector.load %arg4[%c7_102, %c0_103, %c0_104] : memref<9x32x32xbf16, #tpu.memory_space<vmem>>, vector<1x32x32xbf16>
    %151 = vector.shape_cast %150 : vector<1x32x32xbf16> to vector<32x32xbf16>
    %cst_105 = arith.constant dense<0.000000e+00> : vector<32x256xf32>
    %152 = tpu.matmul %151, %149, %cst_105 {dimension_numbers = #tpu.dot_dimension_numbers<[1], [0], [0], [1], [0, 0, 1, 1], [], []>} : vector<32x32xbf16>, vector<32x256xbf16>, vector<32x256xf32> -> vector<32x256xf32>
    %153 = arith.addf %148, %152 : vector<32x256xf32>
    %c0_106 = arith.constant 0 : index
    %c145_107 = arith.constant 145 : index
    %154 = vector.load %arg9[%c0_106, %c145_107] : memref<32x512xbf16, #tpu.memory_space<vmem>>, vector<32x256xbf16>
    %155 = vector.broadcast %26 : vector<1x256xbf16> to vector<32x256xbf16>
    %156 = arith.mulf %154, %155 : vector<32x256xbf16>
    %c8_108 = arith.constant 8 : index
    %c0_109 = arith.constant 0 : index
    %c0_110 = arith.constant 0 : index
    %157 = vector.load %arg4[%c8_108, %c0_109, %c0_110] : memref<9x32x32xbf16, #tpu.memory_space<vmem>>, vector<1x32x32xbf16>
    %158 = vector.shape_cast %157 : vector<1x32x32xbf16> to vector<32x32xbf16>
    %cst_111 = arith.constant dense<0.000000e+00> : vector<32x256xf32>
    %159 = tpu.matmul %158, %156, %cst_111 {dimension_numbers = #tpu.dot_dimension_numbers<[1], [0], [0], [1], [0, 0, 1, 1], [], []>} : vector<32x32xbf16>, vector<32x256xbf16>, vector<32x256xf32> -> vector<32x256xf32>
    %160 = arith.addf %153, %159 : vector<32x256xf32>
    %c0_112 = arith.constant 0 : index
    %c0_113 = arith.constant 0 : index
    %161 = vector.load %arg5[%c0_112, %c0_113] : memref<32x1xf32, #tpu.memory_space<vmem>>, vector<32x1xf32>
    %162 = vector.broadcast %161 : vector<32x1xf32> to vector<32x256xf32>
    %163 = arith.addf %160, %162 : vector<32x256xf32>
    %cst_114 = arith.constant 0.000000e+00 : f32
    %164 = vector.broadcast %cst_114 : f32 to vector<32x256xf32>
    %165 = arith.maximumf %163, %164 : vector<32x256xf32>
    %c0_115 = arith.constant 0 : index
    %c0_116 = arith.constant 0 : index
    %166 = vector.load %arg6[%c0_115, %c0_116] : memref<4x32xbf16, #tpu.memory_space<vmem>>, vector<4x32xbf16>
    %167 = arith.truncf %165 : vector<32x256xf32> to vector<32x256xbf16>
    %cst_117 = arith.constant dense<0.000000e+00> : vector<4x256xf32>
    %168 = tpu.matmul %166, %167, %cst_117 {dimension_numbers = #tpu.dot_dimension_numbers<[1], [0], [0], [1], [0, 0, 1, 1], [], []>} : vector<4x32xbf16>, vector<32x256xbf16>, vector<4x256xf32> -> vector<4x256xf32>
    %c0_118 = arith.constant 0 : index
    %c0_119 = arith.constant 0 : index
    %169 = vector.load %arg7[%c0_118, %c0_119] : memref<4x1xf32, #tpu.memory_space<vmem>>, vector<4x1xf32>
    %170 = vector.broadcast %169 : vector<4x1xf32> to vector<4x256xf32>
    %171 = arith.addf %168, %170 : vector<4x256xf32>
    %c0_120 = arith.constant 0 : index
    %c0_121 = arith.constant 0 : index
    %c0_122 = arith.constant 0 : index
    %172 = vector.load %arg8[%c0_120, %c0_121, %c0_122] : memref<1x4x256xf32, #tpu.memory_space<vmem>>, vector<1x4x256xf32>
    %173 = vector.shape_cast %172 : vector<1x4x256xf32> to vector<4x256xf32>
    %174 = vector.shape_cast %171 : vector<4x256xf32> to vector<1x4x256xf32>
    tpu.vector_store %arg8[%c0_120, %c0_121, %c0_122], %174 {strides = array<i32>} : memref<1x4x256xf32, #tpu.memory_space<vmem>>, vector<1x4x256xf32>,
    return
  }
  func.func @transform_0(%arg0: i32) -> (i32, i32, i32) {
    %c0_i32 = arith.constant 0 : i32
    %c0_i32_0 = arith.constant 0 : i32
    %c0_i32_1 = arith.constant 0 : i32
    return %arg0, %c0_i32, %c0_i32_0 : i32, i32, i32
  }
  func.func @transform_1(%arg0: i32) -> (i32, i32, i32) {
    %c0_i32 = arith.constant 0 : i32
    %c0_i32_0 = arith.constant 0 : i32
    %c0_i32_1 = arith.constant 0 : i32
    %c0_i32_2 = arith.constant 0 : i32
    return %c0_i32, %c0_i32_0, %c0_i32_1 : i32, i32, i32
  }
  func.func @transform_2(%arg0: i32) -> (i32, i32) {
    %c0_i32 = arith.constant 0 : i32
    %c0_i32_0 = arith.constant 0 : i32
    %c0_i32_1 = arith.constant 0 : i32
    return %c0_i32, %c0_i32_0 : i32, i32
  }
  func.func @transform_3(%arg0: i32) -> (i32, i32, i32) {
    %c0_i32 = arith.constant 0 : i32
    %c0_i32_0 = arith.constant 0 : i32
    %c0_i32_1 = arith.constant 0 : i32
    %c0_i32_2 = arith.constant 0 : i32
    return %c0_i32, %c0_i32_0, %c0_i32_1 : i32, i32, i32
  }
  func.func @transform_4(%arg0: i32) -> (i32, i32) {
    %c0_i32 = arith.constant 0 : i32
    %c0_i32_0 = arith.constant 0 : i32
    %c0_i32_1 = arith.constant 0 : i32
    return %c0_i32, %c0_i32_0 : i32, i32
  }
  func.func @transform_5(%arg0: i32) -> (i32, i32) {
    %c0_i32 = arith.constant 0 : i32
    %c0_i32_0 = arith.constant 0 : i32
    %c0_i32_1 = arith.constant 0 : i32
    return %c0_i32, %c0_i32_0 : i32, i32
  }
  func.func @transform_6(%arg0: i32) -> (i32, i32) {
    %c0_i32 = arith.constant 0 : i32
    %c0_i32_0 = arith.constant 0 : i32
    %c0_i32_1 = arith.constant 0 : i32
    return %c0_i32, %c0_i32_0 : i32, i32
  }
  func.func @transform_7(%arg0: i32) -> (i32, i32, i32) {
    %c0_i32 = arith.constant 0 : i32
    %c0_i32_0 = arith.constant 0 : i32
    %c0_i32_1 = arith.constant 0 : i32
    return %arg0, %c0_i32, %c0_i32_0 : i32, i32, i32
  }
}

</mosaic_0001>

<bundles_post_ra>
// kernel: common_denoiser_forward.1
= control target key start
LH: loop header
LB: loop body
LE: loop exit
PB: predicated region body
PF: predicated region fallthrough
CT: control target
= control target key end

     0   :  { %s3030_s24 = smov 0   ;;  %s3564_s0 = inlined_call_operand.vmem [shape: bf16[2,4,512], index: 0, kind: input, shape index: {}]   ;;  %s3565_s1 = inlined_call_operand.vmem [shape: bf16[9,32,4], index: 1, kind: input, shape index: {}]   ;;  %s3566_s2 = inlined_call_operand.vmem [shape: f32[32,1], index: 2, kind: input, shape index: {}]   ;;  %s3567_s3 = inlined_call_operand.vmem [shape: bf16[9,32,32], index: 3, kind: input, shape index: {}]   ;;  %s3568_s4 = inlined_call_operand.vmem [shape: f32[32,1], index: 4, kind: input, shape index: {}]   ;;  %s3569_s5 = inlined_call_operand.vmem [shape: bf16[4,32], index: 5, kind: input, shape index: {}]   ;;  %s3570_s6 = inlined_call_operand.vmem [shape: f32[4,1], index: 6, kind: input, shape index: {}]   ;;  %s3571_s7 = inlined_call_operand.vmem [shape: f32[2,4,256], index: 7, kind: output, shape index: {}]  }
   0x1 LB: > { %s2618_s25 = sadd.s32 4294967295, %s2977_s24   ;;  %p2622_p0 = scmp.ge.s32.totalorder %s2977_s24, 1  ;;  %s2977_s24 = sphi %s3030_s24, %s17_s24  }
   0x2   : > { %p237_p1 = scmp.lt.s32.totalorder %s2977_s24, 3 }
   0x4   : > { %p238_p2 = pnand %p2622_p0, %p237_p1 }
   0x5   : > { %v280_v0 = vlaneseq (!%p238_p2)  ;;  %v2979_v1 = vmov (!%p238_p2), 1983009808   ;;  %p269_p3 = scmp.lt.s32.totalorder (!%p238_p2), %s2618_s25, 1  ;;  %v2980_v9 = vmov (!%p238_p2), 0.0   ;;  %s2981_s30 = smov (!%p238_p2), 111   ;;  %v2986_v24 = vmov (!%p238_p2), 0  }
   0x6   : > { %241 = sbr.rel (%p238_p2) target bundleno = 1411 (0x583), region = 48  ;;  %v328_v2 = vunpack.c.l.s4 (!%p238_p2), %v2979_v1  ;;  %s2982_s8 = smov (!%p238_p2), 127   ;;  %432 = vmatprep.mubr.bf16.mxu0 (!%p238_p2), %v2986_v24  ;;  %2932 = vset.pattern.permute.xlu1 (!%p238_p2), %v2986_v24  ;;  %vm337_vm4 = vcmask (!%p238_p2), 908288   ;;  %vm568_vm5 = vcmask (!%p238_p2), 924672   ;;  %vm690_vm6 = vcmask (!%p238_p2), 1039360   ;;  %v2934_v49 = vld [vmem:[%s3565_s1 + $0x10] sm:$0xff] (!%p238_p2)  }
   0x7   : > { %v281_v3 = vand.u32 (!%p238_p2), 127, %v280_v0  ;;  %v331_v4 = vshrl.u32 (!%p238_p2), %v280_v0, 7  ;;  %s2983_s9 = smov (!%p238_p2), 113   ;;  %s2984_s10 = smov (!%p238_p2), 16   ;;  %2931 = vset.pattern.permute.xlu0 (!%p238_p2), %v2986_v24  ;;  %1541 = vmatprep.mubr.bf16.mxu1 (!%p238_p2), %v2986_v24  ;;  %vm383_vm7 = vcmask (!%p238_p2), 130048   ;;  %vm393_vm8 = vcmask (!%p238_p2), 1041408  }
   0x8   : > { %v329_v7 = vunpack.c.0.s8 (!%p238_p2), %v328_v2  ;;  %s2985_s11 = smov (!%p238_p2), 1   ;;  %s2987_s12 = smov (!%p238_p2), 17   ;;  %vm386_vm9 = vcmask (!%p238_p2), 31744   ;;  %vm732_vm10 = vcmask (!%p238_p2), 7168   ;;  %v2935_v58 = vld [vmem:[%s3565_s1 + $0x18] sm:$0xff] (!%p238_p2)   ;;  %vm486_vm11 = vcmask (!%p238_p2), 138240  }
   0x9   : > { %v282_v5 = vadd.s32 (!%p238_p2), 128, %v281_v3  ;;  %v287_v6 = vand.u32 (!%p238_p2), 15, %v281_v3  ;;  %s2988_s15 = smov (!%p238_p2), 15   ;;  %vm610_vm12 = vcmask (!%p238_p2), 121856   ;;  %s2989_s22 = smov (!%p238_p2), 112   ;;  %vm1185_vm13 = vcmask (!%p238_p2), 916480  }
   0xa   : > { %v3052_v12 = vsub.s32 (!%p238_p2), %v329_v7, %v331_v4  ;;  %vm1502_vm14 = vcmask (!%p238_p2), 261120  }
   0xb   : > { %v294_v8 = vand.u32 (!%p238_p2), 15, %v282_v5  ;;  %vm307_vm0 = vcmp.ne.s32.totalorder (!%p238_p2), %v287_v6, 0  ;;  %vm315_vm1 = vcmp.ne.s32.totalorder (!%p238_p2), %v287_v6, 15 }
   0xc   : > { %v3048_v10 = vsel (!%p238_p2), %vm307_vm0, 1.0, %v2980_v9  ;;  %v3050_v11 = vsel (!%p238_p2), %vm315_vm1, 1.0, %v2980_v9 }
   0xd   : > { %s3573_s25 = smov (!%p269_p3, %s2618_s25), 1  ;;  %vm308_vm2 = vcmp.ne.s32.totalorder %v294_v8, 0  ;;  %vm316_vm3 = vcmp.ne.s32.totalorder %v294_v8, 15 }
   0xe   : > { %s2782_s26 = sshll.u32 %s3573_s25, 3  ;;  %v3054_v13 = vsel %vm308_vm2, 1.0, %v2980_v9  ;;  %v3056_v14 = vsel %vm316_vm3, 1.0, %v2980_v9 }
   0xf   : > { %s3046_s29 = scalar_lea.vmem %s3564_s0, %s2782_s26  ;;  %v2631_v16 = vpack.c.bf16 %v3054_v13, %v3048_v10  ;;  %v2646_v17 = vpack.c.bf16 %v3056_v14, %v3050_v11 }
  0x10   : > { %v323_v15 = vld [vmem:[%s3046_s29] sm:$0x3f] }
  0x11   : > { %v3064_v18 = vrot.slane %v2631_v16, %v3052_v12  ;;  %v3069_v19 = vrot.slane %v2646_v17, %v3052_v12  ;;  %v368_v20 = vrot.slane %v323_v15, %v3052_v12  ;;  %v361_v21 = vcombine.high %v323_v15, %v323_v15  ;;  %v554_v32 = vld [vmem:[%s3046_s29] sm:$0x3f] }
  0x12   : > { %v686_v42 = vld [vmem:[%s3046_s29] sm:$0x3f] }
  0x13   : > { %334 = vrot.lane.b32.xlu0 %v3064_v18, %s2981_s30  ;;  %687 = vrot.lane.b32.xlu1 %v3064_v18, %s2982_s8  ;;  %v376_v22 = vcombine.high %v368_v20, %v368_v20  ;;  %v375_v23 = vrot.slane %v361_v21, %v3052_v12  ;;  %v906_v59 = vld [vmem:[%s3046_s29 + $0x2] sm:$0x3f] }
  0x14   : > { %v2936_v16 = vld [vmem:[%s3565_s1] sm:$0xff]  }
  0x15   : > { %v1026_v17 = vld [vmem:[%s3046_s29 + $0x2] sm:$0x3f] }
  0x17   : > { %565 = vrot.lane.b32.xlu0 %v3069_v19, %s2983_s9  ;;  %377 = vrot.lane.b32.xlu1 %v368_v20, %s2984_s10 }
  0x1b   : > { %379 = vrot.lane.b32.xlu0 %v376_v22, %s2984_s10  ;;  %381 = vrot.lane.b32.xlu1 %v375_v23, %s2984_s10 }
  0x1f   : > { %907 = vrot.lane.b32.xlu0 %v3069_v19, %s2985_s11 }
  0x85   : > { %v335_v25 = vpop.permute.xlu0 %334  ;;  %v688_v26 = vpop.permute.xlu1 %687 }
  0x86   : > { %v336_v27 = vrot.slane %v335_v25, 6  ;;  %v689_v34 = vrot.slane %v688_v26, 6 }
  0x88   : > { %v338_v28 = vsel %vm337_vm4, %v336_v27, %v335_v25  ;;  %v691_v43 = vsel %vm690_vm6, %v689_v34, %v688_v26 }
  0x89   : > { %v340_v29 = vmul.bf16 %v338_v28, %v323_v15  ;;  %v566_v30 = vpop.permute.xlu0 %565  ;;  %v378_v31 = vpop.permute.xlu1 %377  ;;  %v693_v51 = vmul.bf16 %v691_v43, %v686_v42  ;;  %v1261_v42 = vld [vmem:[%s3046_s29 + $0x2] sm:$0x3f] }
  0x8a   : > { %v567_v33 = vrot.slane %v566_v30, 6 }
  0x8b   : > { %v464_v35 = vcombine.high %v340_v29, %v340_v29  ;;  %v471_v36 = vrot.slane %v340_v29, %v3052_v12  ;;  %v717_v56 = vrot.slane %v693_v51, %v3052_v12  ;;  %v710_v57 = vcombine.high %v693_v51, %v693_v51 }
  0x8c   : > { %v569_v37 = vsel %vm568_vm5, %v567_v33, %v566_v30  ;;  %v1146_v30 = vld [vmem:[%s3046_s29 + $0x2] sm:$0x3f] }
  0x8d   : > { %480 = vrot.lane.b32.xlu1 %v471_v36, %s2987_s12  ;;  %v479_v38 = vcombine.high %v471_v36, %v471_v36  ;;  %v571_v39 = vmul.bf16 %v569_v37, %v554_v32  ;;  %v380_v40 = vpop.permute.xlu0 %379  ;;  %v382_v41 = vpop.permute.xlu1 %381  ;;  %v478_v46 = vrot.slane %v464_v35, %v3052_v12  ;;  %v725_v61 = vcombine.high %v717_v56, %v717_v56  ;;  %v2937_v32 = vld [vmem:[%s3565_s1 + $0x8] sm:$0xff]  }
  0x8e   : > { %v385_v44 = vsel %vm383_vm7, %v380_v40, %v382_v41  ;;  %v384_v45 = vsel %vm383_vm7, %v378_v31, %v380_v40  ;;  %v724_v62 = vrot.slane %v710_v57, %v3052_v12  ;;  %v1170_v35 = vrot.slane %v1146_v30, %v3052_v12 }
  0x8f   : > { %482 = vrot.lane.b32.xlu0 %v479_v38, %s2987_s12  ;;  %v595_v47 = vrot.slane %v571_v39, %v3052_v12  ;;  %2638 = vmatprep.subr.msk.bf16.mxu0 %vm393_vm8, %v385_v44  ;;  %v395_v48 = vsel %vm393_vm8, %v384_v45, 0  ;;  %v588_v50 = vcombine.high %v571_v39, %v571_v39  ;;  %v1163_v37 = vcombine.high %v1146_v30, %v1146_v30 }
  0x90   : > { %401 = vmatpush1.bf16.msra.mxu0 %v395_v48  ;;  %v1178_v39 = vcombine.high %v1170_v35, %v1170_v35 }
  0x91   : > { %484 = vrot.lane.b32.xlu1 %v478_v46, %s2987_s12  ;;  %v908_v52 = vpop.permute.xlu0 %907  ;;  %v603_v53 = vcombine.high %v595_v47, %v595_v47  ;;  %v602_v55 = vrot.slane %v588_v50, %v3052_v12  ;;  %v1177_v41 = vrot.slane %v1163_v37, %v3052_v12  ;;  %v2671_v46 = vld.sshfl [vmem:[%s3046_s29 + $0x2] sm:$0x33 pattern:$0x76325410] }
  0x92   : > { %v909_v54 = vrot.slane %v908_v52, 6  ;;  %v832_v51 = vcombine.high %v2671_v46, %v2671_v46  ;;  %v2951_v37 = vld [vmem:[%s3565_s1 + $0x80] sm:$0xff]  }
  0x93   : > { %1027 = vrot.lane.b32.xlu0 %v3064_v18, %s2988_s15  ;;  %2639 = vmatmul.mubr.msk.bf16.vlgmr.msra.gmra.mrb[0].mxu0 %vm386_vm9, %v2934_v49 }
  0x94   : > { %442 = vmatprep.mubr.bf16.mxu0 %v2986_v24  ;;  %v910_v60 = vsel %vm732_vm10, %v909_v54, %v908_v52 }
  0x95   : > { %604 = vrot.lane.b32.xlu1 %v595_v47, %s2988_s15  ;;  %v912_v63 = vmul.bf16 %v910_v60, %v906_v59  ;;  %v2939_v47 = vld [vmem:[%s3565_s1 + $0x20] sm:$0xff]   ;;  %v840_v60 = vsel %vm393_vm8, %v2671_v46, 0 }
  0x97   : > { %606 = vrot.lane.b32.xlu0 %v603_v53, %s2988_s15  ;;  %v929_v0 = vcombine.high %v912_v63, %v912_v63  ;;  %v936_v1 = vrot.slane %v912_v63, %v3052_v12  ;;  %v1381_v63 = vld [vmem:[%s3566_s2] sm:$0xff] }
  0x99   : > { %608 = vrot.lane.b32.xlu1 %v602_v55, %s2988_s15  ;;  %v944_v2 = vcombine.high %v936_v1, %v936_v1  ;;  %v943_v3 = vrot.slane %v929_v0, %v3052_v12  ;;  %v1382_v0 = vld [vmem:[%s3566_s2 + $0x8] sm:$0xff] }
  0x9b   : > { %726 = vrot.lane.b32.xlu0 %v717_v56, %s2985_s11  ;;  %2640 = vmatmul.mubr.msk.bf16.gmra.mrb[4].mxu0 %vm386_vm9, %v2935_v58  ;;  %v2940_v56 = vld [vmem:[%s3565_s1 + $0x28] sm:$0xff]   ;;  %v2941_v58 = vld [vmem:[%s3565_s1 + $0x30] sm:$0xff]  }
  0x9c   : > { %533 = vmatprep.mubr.bf16.mxu0 %v2986_v24 }
  0x9d   : > { %728 = vrot.lane.b32.xlu1 %v725_v61, %s2985_s11 }
  0x9f   : > { %730 = vrot.lane.b32.xlu0 %v724_v62, %s2985_s11  ;;  %v2942_v62 = vld [vmem:[%s3565_s1 + $0x38] sm:$0xff]  }
  0xa1   : > { %1262 = vrot.lane.b32.xlu1 %v3069_v19, %s2987_s12 }
  0xa3   : > { %945 = vrot.lane.b32.xlu0 %v936_v1, %s2982_s8  ;;  %v1384_v1 = vld [vmem:[%s3566_s2 + $0x18] sm:$0xff] }
  0xa5   : > { %947 = vrot.lane.b32.xlu1 %v944_v2, %s2982_s8 }
  0xa7   : > { %949 = vrot.lane.b32.xlu0 %v943_v3, %s2982_s8  ;;  %v1383_v3 = vld [vmem:[%s3566_s2 + $0x10] sm:$0xff] }
  0xff   : > { %v481_v4 = vpop.permute.xlu1 %480 }
 0x101   : > { %v483_v5 = vpop.permute.xlu0 %482 }
 0x102   : > { %v487_v6 = vsel %vm486_vm11, %v481_v4, %v483_v5  ;;  %v2943_v4 = vld [vmem:[%s3565_s1 + $0x40] sm:$0xff]  }
 0x103   : > { %v485_v7 = vpop.permute.xlu1 %484  ;;  %v496_v9 = vsel %vm393_vm8, %v487_v6, 0  ;;  %v3217_v6 = vpack.c.bf16 %v3054_v13, %v3054_v13  ;;  %v3235_v13 = vpack.c.bf16 %v3050_v11, %v3050_v11  ;;  %v2945_v11 = vld [vmem:[%s3565_s1 + $0x50] sm:$0xff]  }
 0x104   : > { %v488_v8 = vsel %vm486_vm11, %v483_v5, %v485_v7  ;;  %v3221_v7 = vpack.c.bf16 %v3048_v10, %v3048_v10  ;;  %v2944_v10 = vld [vmem:[%s3565_s1 + $0x48] sm:$0xff]  }
 0x105   : > { %v1028_v15 = vpop.permute.xlu0 %1027  ;;  %2643 = vmatprep.subr.msk.bf16.mxu0 %vm393_vm8, %v488_v8  ;;  %v3231_v8 = vpack.c.bf16 %v3056_v14, %v3056_v14  ;;  %v2946_v14 = vld [vmem:[%s3565_s1 + $0x58] sm:$0xff]  }
 0x106   : > { %v1029_v18 = vrot.slane %v1028_v15, 6  ;;  %502 = vmatpush1.bf16.msra.mxu0 %v496_v9 }
 0x107   : > { %v605_v19 = vpop.permute.xlu1 %604 }
 0x108   : > { %v1030_v20 = vsel %vm610_vm12, %v1029_v18, %v1028_v15 }
 0x109   : > { %v1032_v21 = vmul.bf16 %v1030_v20, %v1026_v17  ;;  %2644 = vmatmul.mubr.msk.bf16.vlgmr.msra.gmra.mrb[0].mxu0 %vm386_vm9, %v2936_v16  ;;  %v607_v22 = vpop.permute.xlu0 %606  ;;  %v2947_v20 = vld [vmem:[%s3565_s1 + $0x60] sm:$0xff]  }
 0x10a   : > { %v611_v23 = vsel %vm610_vm12, %v605_v19, %v607_v22  ;;  %543 = vmatprep.mubr.bf16.mxu0 %v2986_v24 }
 0x10b   : > { %v1049_v25 = vcombine.high %v1032_v21, %v1032_v21  ;;  %v1056_v26 = vrot.slane %v1032_v21, %v3052_v12  ;;  %v620_v27 = vsel %vm393_vm8, %v611_v23, 0  ;;  %v609_v28 = vpop.permute.xlu1 %608 }
 0x10c   : > { %v612_v29 = vsel %vm610_vm12, %v607_v22, %v609_v28  ;;  %v2948_v28 = vld [vmem:[%s3565_s1 + $0x68] sm:$0xff]  }
 0x10d   : > { %1065 = vrot.lane.b32.xlu1 %v1056_v26, %s2983_s9  ;;  %v1064_v31 = vcombine.high %v1056_v26, %v1056_v26  ;;  %v727_v33 = vpop.permute.xlu0 %726  ;;  %2653 = vmatprep.subr.msk.bf16.mxu0 %vm393_vm8, %v612_v29  ;;  %v1063_v34 = vrot.slane %v1049_v25, %v3052_v12 }
 0x10e   : > { %626 = vmatpush1.bf16.msra.mxu0 %v620_v27 }
 0x10f   : > { %1067 = vrot.lane.b32.xlu0 %v1064_v31, %s2983_s9  ;;  %v729_v36 = vpop.permute.xlu1 %728 }
 0x110   : > { %v733_v44 = vsel %vm732_vm10, %v727_v33, %v729_v36 }
 0x111   : > { %1069 = vrot.lane.b32.xlu1 %v1063_v34, %s2983_s9  ;;  %2645 = vmatmul.mubr.msk.bf16.gmra.mrb[4].mxu0 %vm386_vm9, %v2937_v32  ;;  %v731_v38 = vpop.permute.xlu0 %730  ;;  %v742_v49 = vsel %vm393_vm8, %v733_v44, 0  ;;  %v2949_v34 = vld [vmem:[%s3565_s1 + $0x70] sm:$0xff]  }
 0x112   : > { %v734_v40 = vsel %vm732_vm10, %v729_v36, %v731_v38  ;;  %657 = vmatprep.mubr.bf16.mxu0 %v2986_v24  ;;  %v2950_v36 = vld [vmem:[%s3565_s1 + $0x78] sm:$0xff]   ;;  %v2952_v38 = vld [vmem:[%s3565_s1 + $0x88] sm:$0xff]  }
 0x113   : > { %1179 = vrot.lane.b32.xlu0 %v1170_v35, %s2989_s22  ;;  %2662 = vmatprep.subr.msk.bf16.mxu0 %vm393_vm8, %v734_v40  ;;  %v1263_v43 = vpop.permute.xlu1 %1262 }
 0x114   : > { %v1264_v45 = vrot.slane %v1263_v43, 6 }
 0x115   : > { %1181 = vrot.lane.b32.xlu1 %v1178_v39, %s2989_s22  ;;  %v946_v57 = vpop.permute.xlu0 %945 }
 0x116   : > { %v1265_v48 = vsel %vm486_vm11, %v1264_v45, %v1263_v43 }
 0x117   : > { %1183 = vrot.lane.b32.xlu0 %v1177_v41, %s2989_s22  ;;  %v1267_v50 = vmul.bf16 %v1265_v48, %v1261_v42  ;;  %v948_v59 = vpop.permute.xlu1 %947 }
 0x118   : > { %v951_v2 = vsel %vm690_vm6, %v946_v57, %v948_v59 }
 0x119   : > { %v1284_v52 = vcombine.high %v1267_v50, %v1267_v50  ;;  %2654 = vmatmul.mubr.msk.bf16.vlgmr.msra.gmra.mrb[0].mxu0 %vm386_vm9, %v2939_v47  ;;  %v1291_v53 = vrot.slane %v1267_v50, %v3052_v12  ;;  %v960_v5 = vsel %vm393_vm8, %v951_v2, 0 }
 0x11a   : > { %748 = vmatpush1.bf16.msra.mxu0 %v742_v49  ;;  %667 = vmatprep.mubr.bf16.mxu0 %v2986_v24 }
 0x11b   : > { %1300 = vrot.lane.b32.xlu1 %v1291_v53, %s2981_s30  ;;  %v1299_v54 = vcombine.high %v1291_v53, %v1291_v53  ;;  %v1298_v55 = vrot.slane %v1284_v52, %v3052_v12  ;;  %2672 = vmatprep.subr.msk.bf16.mxu0 %vm393_vm8, %v832_v51  ;;  %v950_v12 = vpop.permute.xlu0 %949 }
 0x11c   : > { %v952_v61 = vsel %vm690_vm6, %v948_v59, %v950_v12 }
 0x11d   : > { %1302 = vrot.lane.b32.xlu0 %v1299_v54, %s2981_s30 }
 0x11f   : > { %1304 = vrot.lane.b32.xlu1 %v1298_v55, %s2981_s30 }
 0x121   : > { %2655 = vmatmul.mubr.msk.bf16.gmra.mrb[4].mxu0 %vm386_vm9, %v2940_v56  ;;  %1387 = vperm.xlu0 %2931, %v1381_v63  }
 0x122   : > { %779 = vmatprep.mubr.bf16.mxu0 %v2986_v24 }
 0x123   : > { %1392 = vperm.xlu1 %2932, %v1382_v0  }
 0x125   : > { %1402 = vperm.xlu0 %2931, %v1384_v1  }
 0x127   : > { %1397 = vperm.xlu1 %2932, %v1383_v3  }
 0x129   : > { %2663 = vmatmul.mubr.msk.bf16.vlgmr.msra.gmra.mrb[0].mxu0 %vm386_vm9, %v2941_v58  ;;  %1445 = vrot.lane.b32.xlu0 %v3217_v6, %s2981_s30 }
 0x12a   : > { %789 = vmatprep.mubr.bf16.mxu0 %v2986_v24  ;;  %846 = vmatpush1.bf16.msra.mxu0 %v840_v60 }
 0x12b   : > { %2681 = vmatprep.subr.msk.bf16.mxu0 %vm393_vm8, %v952_v61  ;;  %1443 = vrot.lane.b32.xlu1 %v3221_v7, %s2981_s30 }
 0x12d   : > { %1659 = vrot.lane.b32.xlu0 %v3231_v8, %s2983_s9 }
 0x12f   : > { %1657 = vrot.lane.b32.xlu1 %v3235_v13, %s2983_s9 }
 0x131   : > { %2664 = vmatmul.mubr.msk.bf16.gmra.mrb[4].mxu0 %vm386_vm9, %v2942_v62  ;;  %1781 = vrot.lane.b32.xlu0 %v3217_v6, %s2982_s8 }
 0x132   : > { %877 = vmatprep.mubr.bf16.mxu0 %v2986_v24 }
 0x133   : > { %1779 = vrot.lane.b32.xlu1 %v3221_v7, %s2982_s8 }
 0x137   : > { %1482 = vrot.lane.b32.xlu1 %v2986_v24, %s2984_s10 }
 0x139   : > { %2673 = vmatmul.mubr.msk.bf16.vlgmr.msra.gmra.mrb[0].mxu0 %vm386_vm9, %v2943_v4 }
 0x13a   : > { %887 = vmatprep.mubr.bf16.mxu0 %v2986_v24  ;;  %966 = vmatpush1.bf16.msra.mxu0 %v960_v5 }
 0x141   : > { %2674 = vmatmul.mubr.msk.bf16.gmra.mrb[4].mxu0 %vm386_vm9, %v2944_v10 }
 0x142   : > { %997 = vmatprep.mubr.bf16.mxu0 %v2986_v24 }
 0x149   : > { %2682 = vmatmul.mubr.msk.bf16.vlgmr.msra.gmra.mrb[0].mxu0 %vm386_vm9, %v2945_v11 }
 0x14a   : > { %1007 = vmatprep.mubr.bf16.mxu0 %v2986_v24 }
 0x151   : > { %2683 = vmatmul.mubr.msk.bf16.gmra.mrb[4].mxu0 %vm386_vm9, %v2946_v14 }
 0x152   : > { %1117 = vmatprep.mubr.bf16.mxu0 %v2986_v24 }
 0x17f   : > { %v1066_v9 = vpop.permute.xlu1 %1065 }
 0x181   : > { %v1068_v15 = vpop.permute.xlu0 %1067 }
 0x182   : > { %v1071_v16 = vsel %vm568_vm5, %v1066_v9, %v1068_v15 }
 0x183   : > { %v1070_v17 = vpop.permute.xlu1 %1069  ;;  %v1080_v19 = vsel %vm393_vm8, %v1071_v16, 0 }
 0x184   : > { %v1072_v18 = vsel %vm568_vm5, %v1068_v15, %v1070_v17 }
 0x185   : > { %2690 = vmatprep.subr.msk.bf16.mxu0 %vm393_vm8, %v1072_v18  ;;  %v1180_v21 = vpop.permute.xlu0 %1179 }
 0x186   : > { %1086 = vmatpush1.bf16.msra.mxu0 %v1080_v19 }
 0x187   : > { %v1182_v22 = vpop.permute.xlu1 %1181 }
 0x188   : > { %v1186_v23 = vsel %vm1185_vm13, %v1180_v21, %v1182_v22 }
 0x189   : > { %2691 = vmatmul.mubr.msk.bf16.vlgmr.msra.gmra.mrb[0].mxu0 %vm386_vm9, %v2947_v20  ;;  %v1184_v25 = vpop.permute.xlu0 %1183  ;;  %v1195_v26 = vsel %vm393_vm8, %v1186_v23, 0 }
 0x18a   : > { %v1187_v27 = vsel %vm1185_vm13, %v1182_v22, %v1184_v25  ;;  %1127 = vmatprep.mubr.bf16.mxu0 %v2986_v24 }
 0x18b   : > { %2699 = vmatprep.subr.msk.bf16.mxu0 %vm393_vm8, %v1187_v27 }
 0x18c   : > { %1201 = vmatpush1.bf16.msra.mxu0 %v1195_v26 }
 0x18d   : > { %v1301_v29 = vpop.permute.xlu1 %1300 }
 0x18f   : > { %v1303_v30 = vpop.permute.xlu0 %1302 }
 0x190   : > { %v1306_v33 = vsel %vm337_vm4, %v1301_v29, %v1303_v30 }
 0x191   : > { %2692 = vmatmul.mubr.msk.bf16.gmra.mrb[4].mxu0 %vm386_vm9, %v2948_v28  ;;  %v1305_v31 = vpop.permute.xlu1 %1304  ;;  %v1315_v35 = vsel %vm393_vm8, %v1306_v33, 0 }
 0x192   : > { %1232 = vmatprep.mubr.bf16.mxu0 %v2986_v24  ;;  %v1307_v32 = vsel %vm337_vm4, %v1303_v30, %v1305_v31 }
 0x193   : > { %2708 = vmatprep.subr.msk.bf16.mxu0 %vm393_vm8, %v1307_v32 }
 0x199   : > { %2700 = vmatmul.mubr.msk.bf16.vlgmr.msra.gmra.mrb[0].mxu0 %vm386_vm9, %v2949_v34 }
 0x19a   : > { %1242 = vmatprep.mubr.bf16.mxu0 %v2986_v24  ;;  %1321 = vmatpush1.bf16.msra.mxu0 %v1315_v35 }
 0x1a0   : > { %v1388_v39 = vpop.permute.xlu0 %1387 }
 0x1a1   : > { %2701 = vmatmul.mubr.msk.bf16.gmra.mrb[4].mxu0 %vm386_vm9, %v2950_v36 }
 0x1a2   : > { %1352 = vmatprep.mubr.bf16.mxu0 %v2986_v24  ;;  %v1393_v43 = vpop.permute.xlu1 %1392 }
 0x1a4   : > { %v1403_v12 = vpop.permute.xlu0 %1402 }
 0x1a6   : > { %v1398_v54 = vpop.permute.xlu1 %1397 }
 0x1a8   : > { %v1446_v5 = vpop.permute.xlu0 %1445 }
 0x1a9   : > { %2709 = vmatmul.mubr.msk.bf16.vlgmr.msra.gmra.mrb[0].mxu0 %vm386_vm9, %v2951_v37 }
 0x1aa   : > { %1362 = vmatprep.mubr.bf16.mxu0 %v2986_v24  ;;  %v1444_v10 = vpop.permute.xlu1 %1443 }
 0x1ab   : > { %v1447_v14 = vsel %vm337_vm4, %v1444_v10, %v1446_v5  ;;  %v1451_v16 = vmul.bf16 0, %v1444_v10 }
 0x1ac   : > { %v1660_v18 = vpop.permute.xlu0 %1659 }
 0x1ae   : > { %v1658_v19 = vpop.permute.xlu1 %1657 }
 0x1af   : > { %v1661_v21 = vsel %vm568_vm5, %v1658_v19, %v1660_v18  ;;  %v1665_v25 = vmul.bf16 0, %v1658_v19 }
 0x1b0   : > { %v1782_v26 = vpop.permute.xlu0 %1781 }
 0x1b1   : > { %2710 = vmatmul.mubr.msk.bf16.gmra.mrb[4].mxu0 %vm386_vm9, %v2952_v38 }
 0x1b2   : > { %2549 = vmatprep.mubr.bf16.mxu0 %v2986_v24  ;;  %v1780_v27 = vpop.permute.xlu1 %1779 }
 0x1b3   : > { %v1783_v30 = vsel %vm690_vm6, %v1780_v27, %v1782_v26 }
 0x1b6   : > { %v1483_v34 = vpop.permute.xlu1 %1482 }
 0x27c   : > { %v1354_v40 = vpop.f32.mrb[0].mxu0 }
 0x27d   : > { %v1405_v41 = vadd.f32 %v1388_v39, %v1354_v40  ;;  %v1356_v42 = vpop.f32.mrb[1].mxu0 }
 0x27e   : > { %v1406_v44 = vadd.f32 %v1388_v39, %v1356_v42  ;;  %v1358_v45 = vpop.f32.mrb[2].mxu0 }
 0x27f   : > { %v1407_v46 = vadd.f32 %v1393_v43, %v1358_v45  ;;  %v1360_v47 = vpop.f32.mrb[3].mxu0  ;;  %v1413_v49 = vmax.f32 %v1405_v41, 0.0 }
 0x280   : > { %v1408_v48 = vadd.f32 %v1393_v43, %v1360_v47  ;;  %v1414_v51 = vmax.f32 %v1406_v44, 0.0 }
 0x281   : > { %v1415_v50 = vmax.f32 %v1407_v46, 0.0 }
 0x282   : > { %v1416_v52 = vmax.f32 %v1408_v48, 0.0 }
 0x283   : > { %v3304_v53 = vpack.c.bf16 %v1415_v50, %v1413_v49  ;;  %v2954_v50 = vld [vmem:[%s3567_s3 + $0x18] sm:$0xff]  }
 0x284   : > { %v3306_v55 = vpack.c.bf16 %v1416_v52, %v1414_v51  ;;  %v1364_v56 = vpop.f32.mrb[4].mxu0 }
 0x285   : > { %v1409_v57 = vadd.f32 %v1398_v54, %v1364_v56  ;;  %v1366_v58 = vpop.f32.mrb[5].mxu0  ;;  %1484 = vrot.lane.b32.xlu1 %v3304_v53, %s2984_s10  ;;  %v1452_v9 = vmul.bf16 %v1447_v14, %v3304_v53  ;;  %v1666_v22 = vmul.bf16 %v1661_v21, %v3304_v53  ;;  %v1788_v31 = vmul.bf16 %v1783_v30, %v3304_v53 }
 0x286   : > { %v1410_v59 = vadd.f32 %v1398_v54, %v1366_v58  ;;  %v1368_v60 = vpop.f32.mrb[6].mxu0  ;;  %1486 = vrot.lane.b32.xlu0 %v3306_v55, %s2984_s10  ;;  %v1453_v15 = vmul.bf16 %v1446_v5, %v3306_v55  ;;  %v1667_v23 = vmul.bf16 %v1660_v18, %v3306_v55  ;;  %v1789_v32 = vmul.bf16 %v1782_v26, %v3306_v55 }
 0x287   : > { %v1411_v61 = vadd.f32 %v1403_v12, %v1368_v60  ;;  %v1370_v62 = vpop.f32.mrb[7].mxu0  ;;  %v1417_v0 = vmax.f32 %v1409_v57, 0.0 }
 0x288   : > { %v1412_v63 = vadd.f32 %v1403_v12, %v1370_v62  ;;  %v1418_v2 = vmax.f32 %v1410_v59, 0.0 }
 0x289   : > { %v1419_v1 = vmax.f32 %v1411_v61, 0.0 }
 0x28a   : > { %v1420_v3 = vmax.f32 %v1412_v63, 0.0  ;;  %v2955_v63 = vld [vmem:[%s3567_s3] sm:$0xff]  }
 0x28b   : > { %v3312_v4 = vpack.c.bf16 %v1419_v1, %v1417_v0 }
 0x28c   : > { %v3314_v11 = vpack.c.bf16 %v1420_v3, %v1418_v2 }
 0x28d   : > { %1490 = vrot.lane.b32.xlu0 %v3312_v4, %s2984_s10  ;;  %v1455_v17 = vmul.bf16 %v1447_v14, %v3312_v4  ;;  %v1669_v28 = vmul.bf16 %v1661_v21, %v3312_v4 }
 0x28e   : > { %1492 = vrot.lane.b32.xlu1 %v3314_v11, %s2984_s10  ;;  %v1456_v20 = vmul.bf16 %v1446_v5, %v3314_v11  ;;  %v1670_v29 = vmul.bf16 %v1660_v18, %v3314_v11  ;;  %v1792_v33 = vmul.bf16 %v1782_v26, %v3314_v11 }
 0x291   : > { %1488 = vrot.lane.b32.xlu0 %v2986_v24, %s2984_s10 }
 0x292   : > { %1580 = vrot.lane.b32.xlu1 %v1452_v9, %s2987_s12  ;;  %v2956_v9 = vld [vmem:[%s3567_s3 + $0x8] sm:$0xff]  }
 0x295   : > { %1582 = vrot.lane.b32.xlu0 %v1453_v15, %s2987_s12 }
 0x296   : > { %1578 = vrot.lane.b32.xlu1 %v1451_v16, %s2987_s12 }
 0x299   : > { %1989 = vrot.lane.b32.xlu0 %v3235_v13, %s2985_s11 }
 0x29a   : > { %1991 = vrot.lane.b32.xlu1 %v3231_v8, %s2985_s11 }
 0x29d   : > { %1586 = vrot.lane.b32.xlu0 %v1455_v17, %s2987_s12 }
 0x29e   : > { %1588 = vrot.lane.b32.xlu1 %v1456_v20, %s2987_s12 }
 0x2a1   : > { %1584 = vrot.lane.b32.xlu0 %v1451_v16, %s2987_s12 }
 0x2a2   : > { %1694 = vrot.lane.b32.xlu1 %v1666_v22, %s2988_s15 }
 0x2a5   : > { %1696 = vrot.lane.b32.xlu0 %v1667_v23, %s2988_s15 }
 0x2a6   : > { %1692 = vrot.lane.b32.xlu1 %v1665_v25, %s2988_s15 }
 0x2a9   : > { %2111 = vrot.lane.b32.xlu0 %v3221_v7, %s2988_s15  ;;  %v1787_v7 = vmul.bf16 0, %v1780_v27  ;;  %v2957_v27 = vld [vmem:[%s3567_s3 + $0x20] sm:$0xff]  }
 0x2aa   : > { %2113 = vrot.lane.b32.xlu1 %v3217_v6, %s2988_s15  ;;  %v1791_v6 = vmul.bf16 %v1783_v30, %v3312_v4 }
 0x2ad   : > { %1700 = vrot.lane.b32.xlu0 %v1669_v28, %s2988_s15 }
 0x2ae   : > { %1702 = vrot.lane.b32.xlu1 %v1670_v29, %s2988_s15 }
 0x2b1   : > { %1698 = vrot.lane.b32.xlu0 %v1665_v25, %s2988_s15 }
 0x2b2   : > { %1816 = vrot.lane.b32.xlu1 %v1788_v31, %s2985_s11 }
 0x2b5   : > { %1818 = vrot.lane.b32.xlu0 %v1789_v32, %s2985_s11 }
 0x2b6   : > { %1814 = vrot.lane.b32.xlu1 %v1787_v7, %s2985_s11 }
 0x2b9   : > { %1822 = vrot.lane.b32.xlu0 %v1791_v6, %s2985_s11 }
 0x2ba   : > { %1824 = vrot.lane.b32.xlu1 %v1792_v33, %s2985_s11  ;;  %v2958_v33 = vld [vmem:[%s3567_s3 + $0x28] sm:$0xff]  }
 0x2bd   : > { %1820 = vrot.lane.b32.xlu0 %v1787_v7, %s2985_s11 }
 0x2be   : > { %2341 = vrot.lane.b32.xlu1 %v3235_v13, %s2987_s12 }
 0x2c1   : > { %2343 = vrot.lane.b32.xlu0 %v3231_v8, %s2987_s12  ;;  %v2953_v8 = vld [vmem:[%s3567_s3 + $0x10] sm:$0xff]  }
 0x2f7   : > { %v1485_v35 = vpop.permute.xlu1 %1484 }
 0x2f8   : > { %v1487_v36 = vpop.permute.xlu0 %1486  ;;  %v1494_v38 = vsel %vm383_vm7, %v1483_v34, %v1485_v35 }
 0x2f9   : > { %v1495_v37 = vsel %vm383_vm7, %v1485_v35, %v1487_v36 }
 0x2fa   : > { %1509 = vmatprep.subr.bf16.mxu1 %v1495_v37 }
 0x2fb   : > { %1510 = vmatpush1.bf16.msra.mxu1 %v1494_v38 }
 0x2ff   : > { %v1491_v39 = vpop.permute.xlu0 %1490 }
 0x300   : > { %v1493_v40 = vpop.permute.xlu1 %1492 }
 0x301   : > { %v1497_v41 = vsel %vm383_vm7, %v1491_v39, %v1493_v40 }
 0x302   : > { %1511 = vmatprep.subr.bf16.mxu1 %v1497_v41  ;;  %v2959_v41 = vld [vmem:[%s3567_s3 + $0x30] sm:$0xff]  }
 0x303   : > { %v1489_v42 = vpop.permute.xlu0 %1488 }
 0x304   : > { %v1581_v43 = vpop.permute.xlu1 %1580  ;;  %v1496_v13 = vsel %vm383_vm7, %v1489_v42, %v1491_v39 }
 0x305   : > { %1512 = vmatpush1.bf16.msra.mxu1 %v1496_v13 }
 0x307   : > { %v1583_v44 = vpop.permute.xlu0 %1582 }
 0x308   : > { %2717 = vmatmul.mubr.msk.bf16.vlgmr.msra.gmra.mrb[0].mxu1 %vm1502_vm14, %v2953_v8  ;;  %v1579_v45 = vpop.permute.xlu1 %1578  ;;  %v1591_v46 = vsel %vm486_vm11, %v1581_v43, %v1583_v44  ;;  %v2961_v44 = vld [vmem:[%s3567_s3 + $0x40] sm:$0xff]  }
 0x309   : > { %v1590_v47 = vsel %vm486_vm11, %v1579_v45, %v1581_v43  ;;  %1604 = vmatprep.subr.bf16.mxu1 %v1591_v46  ;;  %1551 = vmatprep.mubr.bf16.mxu1 %v2986_v24  ;;  %v2465_v45 = vld [vmem:[%s3568_s4 + $0x10] sm:$0xff]  ;;  %v2508_v46 = vld [vmem:[%s3570_s6] sm:$0xf] }
 0x30a   : > { %1605 = vmatpush1.bf16.msra.mxu1 %v1590_v47  ;;  %v2962_v47 = vld [vmem:[%s3567_s3 + $0x48] sm:$0xff]  }
 0x30b   : > { %v1990_v48 = vpop.permute.xlu0 %1989 }
 0x30c   : > { %v1992_v49 = vpop.permute.xlu1 %1991  ;;  %v1997_v59 = vmul.bf16 %v1990_v48, %v3304_v53  ;;  %v2000_v0 = vmul.bf16 %v1990_v48, %v3312_v4 }
 0x30d   : > { %v1993_v51 = vsel %vm732_vm10, %v1990_v48, %v1992_v49  ;;  %v1999_v52 = vmul.bf16 0, %v1992_v49 }
 0x30e   : > { %v1998_v54 = vmul.bf16 %v1993_v51, %v3306_v55  ;;  %v2001_v58 = vmul.bf16 %v1993_v51, %v3314_v11 }
 0x30f   : > { %v1587_v56 = vpop.permute.xlu0 %1586  ;;  %2028 = vrot.lane.b32.xlu0 %v1999_v52, %s2982_s8 }
 0x310   : > { %2718 = vmatmul.mubr.msk.bf16.gmra.mrb[4].mxu1 %vm1502_vm14, %v2954_v50  ;;  %2026 = vrot.lane.b32.xlu1 %v1998_v54, %s2982_s8  ;;  %v1589_v57 = vpop.permute.xlu1 %1588 }
 0x311   : > { %v1593_v12 = vsel %vm486_vm11, %v1587_v56, %v1589_v57  ;;  %1636 = vmatprep.mubr.bf16.mxu1 %v2986_v24 }
 0x312   : > { %1606 = vmatprep.subr.bf16.mxu1 %v1593_v12 }
 0x313   : > { %v1585_v60 = vpop.permute.xlu0 %1584  ;;  %2032 = vrot.lane.b32.xlu0 %v2001_v58, %s2982_s8 }
 0x314   : > { %v1592_v61 = vsel %vm486_vm11, %v1585_v60, %v1587_v56  ;;  %2024 = vrot.lane.b32.xlu1 %v1997_v59, %s2982_s8  ;;  %v1695_v62 = vpop.permute.xlu1 %1694  ;;  %v2963_v59 = vld [vmem:[%s3567_s3 + $0x50] sm:$0xff]  }
 0x315   : > { %1607 = vmatpush1.bf16.msra.mxu1 %v1592_v61 }
 0x317   : > { %v1697_v1 = vpop.permute.xlu0 %1696  ;;  %2030 = vrot.lane.b32.xlu0 %v2000_v0, %s2982_s8 }
 0x318   : > { %2034 = vrot.lane.b32.xlu1 %v1999_v52, %s2982_s8  ;;  %2721 = vmatmul.mubr.msk.bf16.vlgmr.msra.gmra.mrb[0].mxu1 %vm1502_vm14, %v2955_v63  ;;  %v1693_v2 = vpop.permute.xlu1 %1692  ;;  %v1705_v3 = vsel %vm610_vm12, %v1695_v62, %v1697_v1  ;;  %v2964_v63 = vld [vmem:[%s3567_s3 + $0x58] sm:$0xff]  }
 0x319   : > { %v1704_v5 = vsel %vm610_vm12, %v1693_v2, %v1695_v62  ;;  %1718 = vmatprep.subr.bf16.mxu1 %v1705_v3  ;;  %1646 = vmatprep.mubr.bf16.mxu1 %v2986_v24 }
 0x31a   : > { %1719 = vmatpush1.bf16.msra.mxu1 %v1704_v5 }
 0x31b   : > { %v2112_v10 = vpop.permute.xlu0 %2111 }
 0x31c   : > { %v2114_v14 = vpop.permute.xlu1 %2113  ;;  %v2119_v22 = vmul.bf16 %v2112_v10, %v3304_v53  ;;  %v2122_v28 = vmul.bf16 %v2112_v10, %v3312_v4 }
 0x31d   : > { %v2115_v15 = vsel %vm610_vm12, %v2112_v10, %v2114_v14  ;;  %v2121_v16 = vmul.bf16 0, %v2114_v14 }
 0x31e   : > { %v2120_v17 = vmul.bf16 %v2115_v15, %v3306_v55  ;;  %v2123_v20 = vmul.bf16 %v2115_v15, %v3314_v11 }
 0x31f   : > { %v1701_v18 = vpop.permute.xlu0 %1700  ;;  %2150 = vrot.lane.b32.xlu0 %v2121_v16, %s2983_s9 }
 0x320   : > { %2722 = vmatmul.mubr.msk.bf16.gmra.mrb[4].mxu1 %vm1502_vm14, %v2956_v9  ;;  %2148 = vrot.lane.b32.xlu1 %v2120_v17, %s2983_s9  ;;  %v1703_v19 = vpop.permute.xlu1 %1702  ;;  %v2965_v9 = vld [vmem:[%s3567_s3 + $0x60] sm:$0xff]  }
 0x321   : > { %v1707_v21 = vsel %vm610_vm12, %v1701_v18, %v1703_v19  ;;  %1750 = vmatprep.mubr.bf16.mxu1 %v2986_v24 }
 0x322   : > { %1720 = vmatprep.subr.bf16.mxu1 %v1707_v21  ;;  %v2966_v21 = vld [vmem:[%s3567_s3 + $0x68] sm:$0xff]  }
 0x323   : > { %v1699_v23 = vpop.permute.xlu0 %1698  ;;  %2154 = vrot.lane.b32.xlu0 %v2123_v20, %s2983_s9 }
 0x324   : > { %v1706_v25 = vsel %vm610_vm12, %v1699_v23, %v1701_v18  ;;  %2146 = vrot.lane.b32.xlu1 %v2119_v22, %s2983_s9  ;;  %v1817_v26 = vpop.permute.xlu1 %1816 }
 0x325   : > { %1721 = vmatpush1.bf16.msra.mxu1 %v1706_v25 }
 0x327   : > { %v1819_v29 = vpop.permute.xlu0 %1818  ;;  %2152 = vrot.lane.b32.xlu0 %v2122_v28, %s2983_s9 }
 0x328   : > { %2156 = vrot.lane.b32.xlu1 %v2121_v16, %s2983_s9  ;;  %2729 = vmatmul.mubr.msk.bf16.vlgmr.msra.gmra.mrb[0].mxu1 %vm1502_vm14, %v2957_v27  ;;  %v1815_v30 = vpop.permute.xlu1 %1814  ;;  %v1827_v31 = vsel %vm732_vm10, %v1817_v26, %v1819_v29  ;;  %s278_s9 = scalar_lea.vmem %s3571_s7, %s2782_s26 }
 0x329   : > { %v1826_v7 = vsel %vm732_vm10, %v1815_v30, %v1817_v26  ;;  %1840 = vmatprep.subr.bf16.mxu1 %v1827_v31  ;;  %1760 = vmatprep.mubr.bf16.mxu1 %v2986_v24  ;;  %v2967_v30 = vld [vmem:[%s3567_s3 + $0x70] sm:$0xff]  }
 0x32a   : > { %1841 = vmatpush1.bf16.msra.mxu1 %v1826_v7 }
 0x32b   : > { %v1823_v32 = vpop.permute.xlu0 %1822  ;;  %2258 = vrot.lane.b32.xlu0 %v2986_v24, %s2989_s22 }
 0x32c   : > { %2256 = vrot.lane.b32.xlu1 %v3306_v55, %s2989_s22  ;;  %v1825_v6 = vpop.permute.xlu1 %1824 }
 0x32d   : > { %v1829_v34 = vsel %vm732_vm10, %v1823_v32, %v1825_v6 }
 0x32e   : > { %1842 = vmatprep.subr.bf16.mxu1 %v1829_v34 }
 0x32f   : > { %v1821_v35 = vpop.permute.xlu0 %1820  ;;  %2262 = vrot.lane.b32.xlu0 %v3314_v11, %s2989_s22 }
 0x330   : > { %v1828_v36 = vsel %vm732_vm10, %v1821_v35, %v1823_v32  ;;  %2254 = vrot.lane.b32.xlu1 %v3304_v53, %s2989_s22  ;;  %2730 = vmatmul.mubr.msk.bf16.gmra.mrb[4].mxu1 %vm1502_vm14, %v2958_v33  ;;  %v2342_v37 = vpop.permute.xlu1 %2341 }
 0x331   : > { %1843 = vmatpush1.bf16.msra.mxu1 %v1828_v36  ;;  %1872 = vmatprep.mubr.bf16.mxu1 %v2986_v24  ;;  %v2349_v13 = vmul.bf16 %v2342_v37, %v3304_v53  ;;  %v2352_v8 = vmul.bf16 %v2342_v37, %v3312_v4  ;;  %v2968_v36 = vld [vmem:[%s3567_s3 + $0x78] sm:$0xff]  }
 0x332   : > { %1922 = vmatprep.subr.bf16.mxu1 %v3306_v55 }
 0x333   : > { %v2344_v38 = vpop.permute.xlu0 %2343  ;;  %2260 = vrot.lane.b32.xlu0 %v3312_v4, %s2989_s22 }
 0x334   : > { %v2345_v39 = vsel %vm486_vm11, %v2342_v37, %v2344_v38  ;;  %v2351_v40 = vmul.bf16 0, %v2344_v38  ;;  %2264 = vrot.lane.b32.xlu1 %v2986_v24, %s2989_s22  ;;  %v2969_v37 = vld [vmem:[%s3567_s3 + $0x80] sm:$0xff]   ;;  %v2970_v38 = vld [vmem:[%s3567_s3 + $0x88] sm:$0xff]  }
 0x335   : > { %v2350_v42 = vmul.bf16 %v2345_v39, %v3306_v55  ;;  %v2353_v43 = vmul.bf16 %v2345_v39, %v3314_v11  ;;  %v2960_v55 = vld [vmem:[%s3567_s3 + $0x38] sm:$0xff]  }
 0x337   : > { %2380 = vrot.lane.b32.xlu0 %v2351_v40, %s2981_s30 }
 0x338   : > { %2737 = vmatmul.mubr.msk.bf16.vlgmr.msra.gmra.mrb[0].mxu1 %vm1502_vm14, %v2959_v41  ;;  %2378 = vrot.lane.b32.xlu1 %v2350_v42, %s2981_s30 }
 0x339   : > { %1923 = vmatpush1.bf16.msra.mxu1 %v3304_v53  ;;  %1882 = vmatprep.mubr.bf16.mxu1 %v2986_v24  ;;  %v2464_v53 = vld [vmem:[%s3568_s4 + $0x8] sm:$0xff] }
 0x33a   : > { %1924 = vmatprep.subr.bf16.mxu1 %v3314_v11  ;;  %v2463_v11 = vld [vmem:[%s3568_s4] sm:$0xff] }
 0x33b   : > { %2384 = vrot.lane.b32.xlu0 %v2353_v43, %s2981_s30 }
 0x33c   : > { %2376 = vrot.lane.b32.xlu1 %v2349_v13, %s2981_s30 }
 0x33d   : > { %1925 = vmatpush1.bf16.msra.mxu1 %v3312_v4  ;;  %v2466_v4 = vld [vmem:[%s3568_s4 + $0x18] sm:$0xff] }
 0x33f   : > { %2382 = vrot.lane.b32.xlu0 %v2352_v8, %s2981_s30 }
 0x340   : > { %2386 = vrot.lane.b32.xlu1 %v2351_v40, %s2981_s30  ;;  %2738 = vmatmul.mubr.msk.bf16.gmra.mrb[4].mxu1 %vm1502_vm14, %v2960_v55 }
 0x341   : > { %1954 = vmatprep.mubr.bf16.mxu1 %v2986_v24 }
 0x343   : > { %2474 = vperm.xlu0 %2931, %v2464_v53  }
 0x344   : > { %2469 = vperm.xlu1 %2932, %v2463_v11  }
 0x347   : > { %2484 = vperm.xlu0 %2931, %v2466_v4  }
 0x348   : > { %2479 = vperm.xlu1 %2932, %v2465_v45   ;;  %2745 = vmatmul.mubr.msk.bf16.vlgmr.msra.gmra.mrb[0].mxu1 %vm1502_vm14, %v2961_v44 }
 0x349   : > { %1964 = vmatprep.mubr.bf16.mxu1 %v2986_v24 }
 0x34c   : > { %2511 = vperm.xlu1 %2932, %v2508_v46  }
 0x350   : > { %2746 = vmatmul.mubr.msk.bf16.gmra.mrb[4].mxu1 %vm1502_vm14, %v2962_v47 }
 0x351   : > { %2082 = vmatprep.mubr.bf16.mxu1 %v2986_v24 }
 0x381   : > { %v2029_v48 = vpop.permute.xlu0 %2028 }
 0x382   : > { %v2027_v49 = vpop.permute.xlu1 %2026 }
 0x383   : > { %v2037_v50 = vsel %vm690_vm6, %v2027_v49, %v2029_v48 }
 0x384   : > { %2050 = vmatprep.subr.bf16.mxu1 %v2037_v50 }
 0x385   : > { %v2033_v51 = vpop.permute.xlu0 %2032 }
 0x386   : > { %v2025_v52 = vpop.permute.xlu1 %2024 }
 0x387   : > { %v2036_v54 = vsel %vm690_vm6, %v2025_v52, %v2027_v49 }
 0x388   : > { %2051 = vmatpush1.bf16.msra.mxu1 %v2036_v54 }
 0x389   : > { %v2031_v56 = vpop.permute.xlu0 %2030 }
 0x38a   : > { %v2035_v57 = vpop.permute.xlu1 %2034  ;;  %v2038_v12 = vsel %vm690_vm6, %v2031_v56, %v2033_v51 }
 0x38b   : > { %v2039_v58 = vsel %vm690_vm6, %v2033_v51, %v2035_v57 }
 0x38c   : > { %2052 = vmatprep.subr.bf16.mxu1 %v2039_v58 }
 0x38d   : > { %2053 = vmatpush1.bf16.msra.mxu1 %v2038_v12 }
 0x390   : > { %2753 = vmatmul.mubr.msk.bf16.vlgmr.msra.gmra.mrb[0].mxu1 %vm1502_vm14, %v2963_v59 }
 0x391   : > { %v2151_v60 = vpop.permute.xlu0 %2150  ;;  %2092 = vmatprep.mubr.bf16.mxu1 %v2986_v24 }
 0x392   : > { %v2149_v61 = vpop.permute.xlu1 %2148 }
 0x393   : > { %v2159_v62 = vsel %vm568_vm5, %v2149_v61, %v2151_v60 }
 0x394   : > { %2172 = vmatprep.subr.bf16.mxu1 %v2159_v62 }
 0x395   : > { %v2155_v0 = vpop.permute.xlu0 %2154 }
 0x396   : > { %v2147_v1 = vpop.permute.xlu1 %2146 }
 0x397   : > { %v2158_v2 = vsel %vm568_vm5, %v2147_v1, %v2149_v61  ;;  %v2503_v1 = vld [vmem:[%s3569_s5] sm:$0x3] }
 0x398   : > { %2754 = vmatmul.mubr.msk.bf16.gmra.mrb[4].mxu1 %vm1502_vm14, %v2964_v63 }
 0x399   : > { %2173 = vmatpush1.bf16.msra.mxu1 %v2158_v2  ;;  %v2153_v3 = vpop.permute.xlu0 %2152  ;;  %2204 = vmatprep.mubr.bf16.mxu1 %v2986_v24 }
 0x39a   : > { %v2157_v5 = vpop.permute.xlu1 %2156  ;;  %v2160_v14 = vsel %vm568_vm5, %v2153_v3, %v2155_v0 }
 0x39b   : > { %v2161_v10 = vsel %vm568_vm5, %v2155_v0, %v2157_v5 }
 0x39c   : > { %2174 = vmatprep.subr.bf16.mxu1 %v2161_v10 }
 0x39d   : > { %v2259_v15 = vpop.permute.xlu0 %2258  ;;  %2175 = vmatpush1.bf16.msra.mxu1 %v2160_v14 }
 0x39e   : > { %v2257_v16 = vpop.permute.xlu1 %2256 }
 0x39f   : > { %v2267_v17 = vsel %vm1185_vm13, %v2257_v16, %v2259_v15 }
 0x3a0   : > { %2761 = vmatmul.mubr.msk.bf16.vlgmr.msra.gmra.mrb[0].mxu1 %vm1502_vm14, %v2965_v9  ;;  %2280 = vmatprep.subr.bf16.mxu1 %v2267_v17 }
 0x3a1   : > { %v2263_v18 = vpop.permute.xlu0 %2262  ;;  %2214 = vmatprep.mubr.bf16.mxu1 %v2986_v24 }
 0x3a2   : > { %v2255_v19 = vpop.permute.xlu1 %2254 }
 0x3a3   : > { %v2266_v20 = vsel %vm1185_vm13, %v2255_v19, %v2257_v16 }
 0x3a4   : > { %2281 = vmatpush1.bf16.msra.mxu1 %v2266_v20 }
 0x3a5   : > { %v2261_v22 = vpop.permute.xlu0 %2260 }
 0x3a6   : > { %v2265_v23 = vpop.permute.xlu1 %2264  ;;  %v2268_v26 = vsel %vm1185_vm13, %v2261_v22, %v2263_v18 }
 0x3a7   : > { %v2269_v25 = vsel %vm1185_vm13, %v2263_v18, %v2265_v23 }
 0x3a8   : > { %2762 = vmatmul.mubr.msk.bf16.gmra.mrb[4].mxu1 %vm1502_vm14, %v2966_v21  ;;  %2282 = vmatprep.subr.bf16.mxu1 %v2269_v25 }
 0x3a9   : > { %v2381_v27 = vpop.permute.xlu0 %2380  ;;  %2283 = vmatpush1.bf16.msra.mxu1 %v2268_v26  ;;  %2312 = vmatprep.mubr.bf16.mxu1 %v2986_v24 }
 0x3aa   : > { %v2379_v28 = vpop.permute.xlu1 %2378 }
 0x3ab   : > { %v2389_v29 = vsel %vm337_vm4, %v2379_v28, %v2381_v27 }
 0x3ac   : > { %2402 = vmatprep.subr.bf16.mxu1 %v2389_v29 }
 0x3ad   : > { %v2385_v31 = vpop.permute.xlu0 %2384 }
 0x3ae   : > { %v2377_v7 = vpop.permute.xlu1 %2376 }
 0x3af   : > { %v2388_v32 = vsel %vm337_vm4, %v2377_v7, %v2379_v28 }
 0x3b0   : > { %2769 = vmatmul.mubr.msk.bf16.vlgmr.msra.gmra.mrb[0].mxu1 %vm1502_vm14, %v2967_v30 }
 0x3b1   : > { %2403 = vmatpush1.bf16.msra.mxu1 %v2388_v32  ;;  %v2383_v6 = vpop.permute.xlu0 %2382  ;;  %2322 = vmatprep.mubr.bf16.mxu1 %v2986_v24 }
 0x3b2   : > { %v2387_v33 = vpop.permute.xlu1 %2386  ;;  %v2390_v35 = vsel %vm337_vm4, %v2383_v6, %v2385_v31 }
 0x3b3   : > { %v2391_v34 = vsel %vm337_vm4, %v2385_v31, %v2387_v33 }
 0x3b4   : > { %2404 = vmatprep.subr.bf16.mxu1 %v2391_v34 }
 0x3b5   : > { %2405 = vmatpush1.bf16.msra.mxu1 %v2390_v35 }
 0x3b8   : > { %2770 = vmatmul.mubr.msk.bf16.gmra.mrb[4].mxu1 %vm1502_vm14, %v2968_v36 }
 0x3b9   : > { %2434 = vmatprep.mubr.bf16.mxu1 %v2986_v24 }
 0x3c0   : > { %2777 = vmatmul.mubr.msk.bf16.vlgmr.msra.gmra.mrb[0].mxu1 %vm1502_vm14, %v2969_v37 }
 0x3c1   : > { %2444 = vmatprep.mubr.bf16.mxu1 %v2986_v24 }
 0x3c2   : > { %v2475_v43 = vpop.permute.xlu0 %2474 }
 0x3c3   : > { %v2470_v39 = vpop.permute.xlu1 %2469 }
 0x3c6   : > { %v2485_v52 = vpop.permute.xlu0 %2484 }
 0x3c7   : > { %v2480_v47 = vpop.permute.xlu1 %2479 }
 0x3c8   : > { %2778 = vmatmul.mubr.msk.bf16.gmra.mrb[4].mxu1 %vm1502_vm14, %v2970_v38 }
 0x3cb   : > { %v2512_v2 = vpop.permute.xlu1 %2511 }
 0x493   : > { %v2436_v40 = vpop.f32.mrb[0].mxu1 }
 0x494   : > { %v2487_v41 = vadd.f32 %v2470_v39, %v2436_v40  ;;  %v2438_v42 = vpop.f32.mrb[1].mxu1 }
 0x495   : > { %v2488_v13 = vadd.f32 %v2470_v39, %v2438_v42  ;;  %v2440_v55 = vpop.f32.mrb[2].mxu1 }
 0x496   : > { %v2489_v8 = vadd.f32 %v2475_v43, %v2440_v55  ;;  %v2442_v53 = vpop.f32.mrb[3].mxu1  ;;  %v2495_v4 = vmax.f32 %v2487_v41, 0.0 }
 0x497   : > { %v2490_v11 = vadd.f32 %v2475_v43, %v2442_v53  ;;  %v2496_v45 = vmax.f32 %v2488_v13, 0.0 }
 0x498   : > { %v2497_v44 = vmax.f32 %v2489_v8, 0.0 }
 0x499   : > { %v2498_v24 = vmax.f32 %v2490_v11, 0.0 }
 0x49a   : > { %v2504_v46 = vpack.c.bf16 %v2497_v44, %v2495_v4 }
 0x49b   : > { %v2505_v48 = vpack.c.bf16 %v2498_v24, %v2496_v45  ;;  %v2446_v49 = vpop.f32.mrb[4].mxu1 }
 0x49c   : > { %v2491_v50 = vadd.f32 %v2480_v47, %v2446_v49  ;;  %v2448_v51 = vpop.f32.mrb[5].mxu1 }
 0x49d   : > { %v2492_v54 = vadd.f32 %v2480_v47, %v2448_v51  ;;  %v2450_v56 = vpop.f32.mrb[6].mxu1  ;;  %2517 = vmatprep.subr.bf16.mxu0 %v2505_v48 }
 0x49e   : > { %v2493_v57 = vadd.f32 %v2485_v52, %v2450_v56  ;;  %v2452_v58 = vpop.f32.mrb[7].mxu1  ;;  %2518 = vmatpush1.bf16.msra.mxu0 %v2504_v46  ;;  %v2499_v59 = vmax.f32 %v2491_v50, 0.0 }
 0x49f   : > { %v2494_v12 = vadd.f32 %v2485_v52, %v2452_v58  ;;  %v2500_v61 = vmax.f32 %v2492_v54, 0.0 }
 0x4a0   : > { %v2501_v60 = vmax.f32 %v2493_v57, 0.0 }
 0x4a1   : > { %v2502_v62 = vmax.f32 %v2494_v12, 0.0 }
 0x4a2   : > { %v2506_v63 = vpack.c.bf16 %v2501_v60, %v2499_v59 }
 0x4a3   : > { %v2507_v0 = vpack.c.bf16 %v2502_v62, %v2500_v61 }
 0x4a5   : > { %2519 = vmatprep.subr.bf16.mxu0 %v2507_v0 }
 0x4a6   : > { %2520 = vmatpush1.bf16.msra.mxu0 %v2506_v63 }
 0x4a9   : > { %2779 = vmatmul.mubr.msk.bf16.vlgmr.msra.gmra.mrb[8].mxu0 %vm1502_vm14, %v2503_v1 }
 0x57c   : > { %v2551_v3 = vpop.f32.mrb[8].mxu0 }
 0x57d   : > { %v2552_v5 = vadd.f32 %v2551_v3, %v2512_v2  ;;  %v2553_v10 = vpop.f32.mrb[9].mxu0 }
 0x57e   : > { %v2554_v14 = vadd.f32 %v2553_v10, %v2512_v2  ;;  %v2555_v9 = vpop.f32.mrb[10].mxu0 }
 0x57f   : > { %v2556_v15 = vpop.f32.mrb[11].mxu0 }
 0x580   : > { %v2560_v16 = vcombine.low %v2552_v5, %v2554_v14 }
 0x582   : > { %2562 = vst [vmem:[%s278_s9] sm:$0xff] %v2560_v16 }
 0x583 PF: > { %s17_s24 = sadd.s32 1, %s2977_s24  }
 0x584   : > { %p14_p4 = scmp.ge.s32.totalorder %s17_s24, 4  }
 0x586   :  { %16 = sbr.rel (!%p14_p4) target bundleno = 1 (0x1), region = 94 }

</bundles_post_ra>
